<compile_context>
chip_gen: v7x
topology: tpu7x:2x2x1
jax: 0.10.0
libtpu: 0.0.40
codegen_flags: <defaults>
</compile_context>

<pallas_src>
import functools

import jax
import jax.numpy as jnp
from jax.experimental import pallas as pl
from jax.experimental.pallas import tpu as pltpu

EPS = 1e-5   # BatchNorm3d default eps


def _frelu_kernel(w_ref, gamma_ref, beta_ref, colmask_ref, x_ref, o_ref,
                  acc_ref, *, width, lanes_valid):
    """One grid step == one channel.

    w_ref:       SMEM (C*27,)   depthwise 3x3x3 taps, flattened [kd*9+kh*3+kw]
    gamma_ref:   SMEM (C,)      BN weight
    beta_ref:    SMEM (C,)      BN bias
    colmask_ref: VMEM (9, Lp)   in-plane validity mask per (oh, ow) tap
    x_ref:       VMEM (N, D, Lp) this channel's volume, lane-dense L = H*W
    o_ref:       VMEM (N, D, Lp) output
    acc_ref:     VMEM (N, D, Lp) f32 conv-result scratch (BN needs 2 passes)
    """
    c = pl.program_id(0)
    N, D, Lp = x_ref.shape
    W = width
    inv_cnt = 1.0 / float(N * D * lanes_valid)

    # Per-channel tap weights: 27 SMEM scalars, hoisted out of all loops.
    wv = [w_ref[c * 27 + t] for t in range(27)]

    # In-plane validity masks, one (1, Lp) row per (oh, ow): zero wherever the
    # tap crosses an H/W edge on the flattened lane axis, and on lane-pad cols.
    cmask = [colmask_ref[m:m + 1, :] for m in range(9)]
    vmask = cmask[4]                       # centre tap == "real column" mask

    # Depth-offset validity: the sublane rolls wrap within each (D, Lp) slab,
    # so zero exactly the wrapped row per offset.
    d_idx = jax.lax.broadcasted_iota(jnp.int32, (D, 1), 0)
    dmask_lo = (d_idx > 0).astype(jnp.float32)       # od = -1 needs d-1 >= 0
    dmask_hi = (d_idx < D - 1).astype(jnp.float32)   # od = +1 needs d+1 <  D

    # ---- pass 1: depthwise 3x3x3 conv via XLU rolls; store conv + sum ------
    # Conv bias intentionally omitted: training-mode BN subtracts the
    # per-channel mean, which cancels any constant bias exactly.
    s1 = jnp.zeros((1, 1), jnp.float32)
    for n in range(N):                     # N is small; static unroll
        xn = x_ref[n]                      # (D, Lp), leading-dim index is free
        p_lo = jnp.zeros((D, Lp), jnp.float32)    # kd = 0  (uses x[d-1])
        p_mid = jnp.zeros((D, Lp), jnp.float32)   # kd = 1  (uses x[d  ])
        p_hi = jnp.zeros((D, Lp), jnp.float32)    # kd = 2  (uses x[d+1])
        for m in range(9):                 # in-plane tap (oh, ow)
            oh, ow = m // 3 - 1, m % 3 - 1
            s = oh * W + ow                # flattened lane shift
            shifted = xn if s == 0 else pltpu.roll(xn, shift=(-s) % Lp, axis=1)
            mm = cmask[m] * shifted        # wrap / edge contamination -> 0
            p_lo = p_lo + wv[0 * 9 + m] * mm
            p_mid = p_mid + wv[1 * 9 + m] * mm
            p_hi = p_hi + wv[2 * 9 + m] * mm
        acc = (p_mid
               + dmask_lo * pltpu.roll(p_lo, shift=1, axis=0)        # x[d-1]
               + dmask_hi * pltpu.roll(p_hi, shift=D - 1, axis=0))   # x[d+1]
        acc_ref[n] = acc
        s1 = s1 + jnp.sum(acc, keepdims=True)     # pad columns are exactly 0

    mean = s1 * inv_cnt                                   # (1, 1)

    # ---- pass 2: centered (two-pass) biased variance ------------------------
    ssq = jnp.zeros((1, 1), jnp.float32)
    for n in range(N):
        d0 = (acc_ref[n] - mean) * vmask   # keep lane-pad columns out of stats
        ssq = ssq + jnp.sum(d0 * d0, keepdims=True)
    var = ssq * inv_cnt
    scale = gamma_ref[c] * jax.lax.rsqrt(var + EPS)       # (1, 1)
    shift = beta_ref[c] - mean * scale                    # (1, 1)

    # ---- pass 3: normalize + funnel max, fused into the output store -------
    for n in range(N):
        y = acc_ref[n] * scale + shift
        o_ref[n] = jnp.maximum(x_ref[n], y).astype(o_ref.dtype)


def frelu(x, w, b, gamma, beta):
    """x: (N, C, D, H, W) f32; w: (C, 1, 3, 3, 3); b/gamma/beta: (C,).

    The conv bias `b` is accepted for API parity with the PyTorch module but
    not used: with training-mode BatchNorm the mean subtraction cancels a
    constant per-channel bias exactly.
    """
    del b
    N, C, D, H, W = x.shape
    L = H * W
    Lp = ((L + 127) // 128) * 128          # lane-dense: keep stores unmasked

    x3 = x.reshape(N, C, D, L)             # free reshape of contiguous dims
    if Lp != L:
        x3 = jnp.pad(x3, ((0, 0), (0, 0), (0, 0), (0, Lp - L)))

    w_flat = w.reshape(C * 27).astype(jnp.float32)   # 1-D SMEM, no 2-D pad
    gamma = gamma.astype(jnp.float32)
    beta = beta.astype(jnp.float32)

    # Validity of each of the 9 in-plane (oh, ow) taps at the *output* column
    # l = h*W + w; lane-pad columns (l >= L) are invalid for every tap.
    lidx = jnp.arange(Lp, dtype=jnp.int32)
    h_idx = lidx // W
    w_idx = lidx % W
    real = lidx < L
    masks = []
    for oh in (-1, 0, 1):
        for ow in (-1, 0, 1):
            ok = (real & (h_idx + oh >= 0) & (h_idx + oh < H)
                  & (w_idx + ow >= 0) & (w_idx + ow < W))
            masks.append(ok)
    colmask = jnp.stack(masks, axis=0).astype(jnp.float32)   # (9, Lp)

    # VMEM budget derived from the actual per-grid-step footprint.
    blk = N * D * Lp * 4
    vmem_need = 2 * 2 * blk            # x block + out block, double-buffered
    vmem_need += blk                   # acc scratch (single-buffered)
    vmem_need += 2 * 9 * Lp * 4        # colmask
    vmem_limit = int(min(max(vmem_need + (8 << 20), 32 << 20), 100 << 20))

    kernel = functools.partial(_frelu_kernel, width=W, lanes_valid=L)

    out3 = pl.pallas_call(
        kernel,
        out_shape=jax.ShapeDtypeStruct((N, C, D, Lp), x.dtype),
        grid=(C,),
        in_specs=[
            pl.BlockSpec(memory_space=pltpu.MemorySpace.SMEM),        # taps
            pl.BlockSpec(memory_space=pltpu.MemorySpace.SMEM),        # gamma
            pl.BlockSpec(memory_space=pltpu.MemorySpace.SMEM),        # beta
            pl.BlockSpec((9, Lp), lambda c: (0, 0)),                  # colmask
            pl.BlockSpec((N, None, D, Lp), lambda c: (0, c, 0, 0)),   # x[:, c]
        ],
        out_specs=pl.BlockSpec((N, None, D, Lp), lambda c: (0, c, 0, 0)),
        scratch_shapes=[pltpu.VMEM((N, D, Lp), jnp.float32)],
        compiler_params=pltpu.CompilerParams(
            dimension_semantics=("parallel",),   # channels are independent
            vmem_limit_bytes=vmem_limit,
        ),
    )(w_flat, gamma, beta, colmask, x3)

    if Lp != L:
        out3 = out3[..., :L]
    return out3.reshape(N, C, D, H, W)


def frelu_ref(x, w, b, gamma, beta, eps=EPS):
    """Plain-JAX reference mirroring the PyTorch module (training-mode BN)."""
    C = x.shape[1]
    y = jax.lax.conv_general_dilated(
        x, w, window_strides=(1, 1, 1),
        padding=((1, 1), (1, 1), (1, 1)),
        dimension_numbers=("NCDHW", "OIDHW", "NCDHW"),
        feature_group_count=C)
    y = y + b[None, :, None, None, None]
    mean = jnp.mean(y, axis=(0, 2, 3, 4), keepdims=True)
    var = jnp.mean(jnp.square(y - mean), axis=(0, 2, 3, 4), keepdims=True)
    y = (y - mean) * jax.lax.rsqrt(var + eps)
    y = y * gamma[None, :, None, None, None] + beta[None, :, None, None, None]
    return jnp.maximum(x, y)


if __name__ == "__main__":
    N, C, D, H, W = 2, 4, 8, 16, 16

    key = jax.random.PRNGKey(0)
    kx, kw, kb = jax.random.split(key, 3)

    x = jax.random.normal(kx, (N, C, D, H, W), jnp.float32)

    # Deterministic parameter init matching PyTorch Conv3d default init shapes:
    # weight (C, 1, 3, 3, 3), bias (C,), uniform(-1/sqrt(fan_in), 1/sqrt(fan_in)).
    fan_in = 1 * 3 * 3 * 3
    bound = 1.0 / (fan_in ** 0.5)
    w = jax.random.uniform(kw, (C, 1, 3, 3, 3), jnp.float32, -bound, bound)
    b = jax.random.uniform(kb, (C,), jnp.float32, -bound, bound)
    gamma = jnp.ones((C,), jnp.float32)   # BatchNorm3d default weight
    beta = jnp.zeros((C,), jnp.float32)   # BatchNorm3d default bias

    out = frelu(x, w, b, gamma, beta)
    out = jax.block_until_ready(out)

    ref = frelu_ref(x, w, b, gamma, beta)
    err = float(jnp.max(jnp.abs(out - ref)))
    assert jnp.allclose(out, ref, atol=3e-4, rtol=3e-4), f"max abs err {err}"

    print("KERNEL_OK")
</pallas_src>

<mosaic_0001>
module attributes {stable_mosaic.version = 11 : i64} {
  func.func @_frelu_kernel(%arg0: i32, %arg1: memref<108xf32, #tpu.memory_space<smem>>, %arg2: memref<4xf32, #tpu.memory_space<smem>>, %arg3: memref<4xf32, #tpu.memory_space<smem>>, %arg4: memref<9x256xf32, #tpu.memory_space<vmem>>, %arg5: memref<2x1x8x256xf32, #tpu.memory_space<vmem>>, %arg6: memref<2x1x8x256xf32, #tpu.memory_space<vmem>>, %arg7: memref<2x8x256xf32, #tpu.memory_space<vmem>>) attributes {dimension_semantics = [#tpu.dimension_semantics<parallel>], iteration_bounds = array<i64: 4>, scalar_prefetch = 0 : i64, scratch_operands = 1 : i64, tpu.core_type = #tpu.core_type<tc>, window_params = [{transform_indices = @transform_0, window_bounds = array<i64: 108>}, {transform_indices = @transform_1, window_bounds = array<i64: 4>}, {transform_indices = @transform_2, window_bounds = array<i64: 4>}, {pipeline_mode = #tpu.pipeline_mode<synchronous>, transform_indices = @transform_3, window_bounds = array<i64: 9, 256>}, {transform_indices = @transform_4, window_bounds = array<i64: 2, 1, 8, 256>}, {transform_indices = @transform_5, window_bounds = array<i64: 2, 1, 8, 256>}]} {
    %c27_i32 = arith.constant 27 : i32
    %0 = arith.muli %arg0, %c27_i32 : i32
    %c0_i32 = arith.constant 0 : i32
    %1 = arith.addi %0, %c0_i32 : i32
    %2 = arith.index_cast %1 : i32 to index
    %3 = memref.load %arg1[%2] : memref<108xf32, #tpu.memory_space<smem>>
    %c27_i32_0 = arith.constant 27 : i32
    %4 = arith.muli %arg0, %c27_i32_0 : i32
    %c1_i32 = arith.constant 1 : i32
    %5 = arith.addi %4, %c1_i32 : i32
    %6 = arith.index_cast %5 : i32 to index
    %7 = memref.load %arg1[%6] : memref<108xf32, #tpu.memory_space<smem>>
    %c27_i32_1 = arith.constant 27 : i32
    %8 = arith.muli %arg0, %c27_i32_1 : i32
    %c2_i32 = arith.constant 2 : i32
    %9 = arith.addi %8, %c2_i32 : i32
    %10 = arith.index_cast %9 : i32 to index
    %11 = memref.load %arg1[%10] : memref<108xf32, #tpu.memory_space<smem>>
    %c27_i32_2 = arith.constant 27 : i32
    %12 = arith.muli %arg0, %c27_i32_2 : i32
    %c3_i32 = arith.constant 3 : i32
    %13 = arith.addi %12, %c3_i32 : i32
    %14 = arith.index_cast %13 : i32 to index
    %15 = memref.load %arg1[%14] : memref<108xf32, #tpu.memory_space<smem>>
    %c27_i32_3 = arith.constant 27 : i32
    %16 = arith.muli %arg0, %c27_i32_3 : i32
    %c4_i32 = arith.constant 4 : i32
    %17 = arith.addi %16, %c4_i32 : i32
    %18 = arith.index_cast %17 : i32 to index
    %19 = memref.load %arg1[%18] : memref<108xf32, #tpu.memory_space<smem>>
    %c27_i32_4 = arith.constant 27 : i32
    %20 = arith.muli %arg0, %c27_i32_4 : i32
    %c5_i32 = arith.constant 5 : i32
    %21 = arith.addi %20, %c5_i32 : i32
    %22 = arith.index_cast %21 : i32 to index
    %23 = memref.load %arg1[%22] : memref<108xf32, #tpu.memory_space<smem>>
    %c27_i32_5 = arith.constant 27 : i32
    %24 = arith.muli %arg0, %c27_i32_5 : i32
    %c6_i32 = arith.constant 6 : i32
    %25 = arith.addi %24, %c6_i32 : i32
    %26 = arith.index_cast %25 : i32 to index
    %27 = memref.load %arg1[%26] : memref<108xf32, #tpu.memory_space<smem>>
    %c27_i32_6 = arith.constant 27 : i32
    %28 = arith.muli %arg0, %c27_i32_6 : i32
    %c7_i32 = arith.constant 7 : i32
    %29 = arith.addi %28, %c7_i32 : i32
    %30 = arith.index_cast %29 : i32 to index
    %31 = memref.load %arg1[%30] : memref<108xf32, #tpu.memory_space<smem>>
    %c27_i32_7 = arith.constant 27 : i32
    %32 = arith.muli %arg0, %c27_i32_7 : i32
    %c8_i32 = arith.constant 8 : i32
    %33 = arith.addi %32, %c8_i32 : i32
    %34 = arith.index_cast %33 : i32 to index
    %35 = memref.load %arg1[%34] : memref<108xf32, #tpu.memory_space<smem>>
    %c27_i32_8 = arith.constant 27 : i32
    %36 = arith.muli %arg0, %c27_i32_8 : i32
    %c9_i32 = arith.constant 9 : i32
    %37 = arith.addi %36, %c9_i32 : i32
    %38 = arith.index_cast %37 : i32 to index
    %39 = memref.load %arg1[%38] : memref<108xf32, #tpu.memory_space<smem>>
    %c27_i32_9 = arith.constant 27 : i32
    %40 = arith.muli %arg0, %c27_i32_9 : i32
    %c10_i32 = arith.constant 10 : i32
    %41 = arith.addi %40, %c10_i32 : i32
    %42 = arith.index_cast %41 : i32 to index
    %43 = memref.load %arg1[%42] : memref<108xf32, #tpu.memory_space<smem>>
    %c27_i32_10 = arith.constant 27 : i32
    %44 = arith.muli %arg0, %c27_i32_10 : i32
    %c11_i32 = arith.constant 11 : i32
    %45 = arith.addi %44, %c11_i32 : i32
    %46 = arith.index_cast %45 : i32 to index
    %47 = memref.load %arg1[%46] : memref<108xf32, #tpu.memory_space<smem>>
    %c27_i32_11 = arith.constant 27 : i32
    %48 = arith.muli %arg0, %c27_i32_11 : i32
    %c12_i32 = arith.constant 12 : i32
    %49 = arith.addi %48, %c12_i32 : i32
    %50 = arith.index_cast %49 : i32 to index
    %51 = memref.load %arg1[%50] : memref<108xf32, #tpu.memory_space<smem>>
    %c27_i32_12 = arith.constant 27 : i32
    %52 = arith.muli %arg0, %c27_i32_12 : i32
    %c13_i32 = arith.constant 13 : i32
    %53 = arith.addi %52, %c13_i32 : i32
    %54 = arith.index_cast %53 : i32 to index
    %55 = memref.load %arg1[%54] : memref<108xf32, #tpu.memory_space<smem>>
    %c27_i32_13 = arith.constant 27 : i32
    %56 = arith.muli %arg0, %c27_i32_13 : i32
    %c14_i32 = arith.constant 14 : i32
    %57 = arith.addi %56, %c14_i32 : i32
    %58 = arith.index_cast %57 : i32 to index
    %59 = memref.load %arg1[%58] : memref<108xf32, #tpu.memory_space<smem>>
    %c27_i32_14 = arith.constant 27 : i32
    %60 = arith.muli %arg0, %c27_i32_14 : i32
    %c15_i32 = arith.constant 15 : i32
    %61 = arith.addi %60, %c15_i32 : i32
    %62 = arith.index_cast %61 : i32 to index
    %63 = memref.load %arg1[%62] : memref<108xf32, #tpu.memory_space<smem>>
    %c27_i32_15 = arith.constant 27 : i32
    %64 = arith.muli %arg0, %c27_i32_15 : i32
    %c16_i32 = arith.constant 16 : i32
    %65 = arith.addi %64, %c16_i32 : i32
    %66 = arith.index_cast %65 : i32 to index
    %67 = memref.load %arg1[%66] : memref<108xf32, #tpu.memory_space<smem>>
    %c27_i32_16 = arith.constant 27 : i32
    %68 = arith.muli %arg0, %c27_i32_16 : i32
    %c17_i32 = arith.constant 17 : i32
    %69 = arith.addi %68, %c17_i32 : i32
    %70 = arith.index_cast %69 : i32 to index
    %71 = memref.load %arg1[%70] : memref<108xf32, #tpu.memory_space<smem>>
    %c27_i32_17 = arith.constant 27 : i32
    %72 = arith.muli %arg0, %c27_i32_17 : i32
    %c18_i32 = arith.constant 18 : i32
    %73 = arith.addi %72, %c18_i32 : i32
    %74 = arith.index_cast %73 : i32 to index
    %75 = memref.load %arg1[%74] : memref<108xf32, #tpu.memory_space<smem>>
    %c27_i32_18 = arith.constant 27 : i32
    %76 = arith.muli %arg0, %c27_i32_18 : i32
    %c19_i32 = arith.constant 19 : i32
    %77 = arith.addi %76, %c19_i32 : i32
    %78 = arith.index_cast %77 : i32 to index
    %79 = memref.load %arg1[%78] : memref<108xf32, #tpu.memory_space<smem>>
    %c27_i32_19 = arith.constant 27 : i32
    %80 = arith.muli %arg0, %c27_i32_19 : i32
    %c20_i32 = arith.constant 20 : i32
    %81 = arith.addi %80, %c20_i32 : i32
    %82 = arith.index_cast %81 : i32 to index
    %83 = memref.load %arg1[%82] : memref<108xf32, #tpu.memory_space<smem>>
    %c27_i32_20 = arith.constant 27 : i32
    %84 = arith.muli %arg0, %c27_i32_20 : i32
    %c21_i32 = arith.constant 21 : i32
    %85 = arith.addi %84, %c21_i32 : i32
    %86 = arith.index_cast %85 : i32 to index
    %87 = memref.load %arg1[%86] : memref<108xf32, #tpu.memory_space<smem>>
    %c27_i32_21 = arith.constant 27 : i32
    %88 = arith.muli %arg0, %c27_i32_21 : i32
    %c22_i32 = arith.constant 22 : i32
    %89 = arith.addi %88, %c22_i32 : i32
    %90 = arith.index_cast %89 : i32 to index
    %91 = memref.load %arg1[%90] : memref<108xf32, #tpu.memory_space<smem>>
    %c27_i32_22 = arith.constant 27 : i32
    %92 = arith.muli %arg0, %c27_i32_22 : i32
    %c23_i32 = arith.constant 23 : i32
    %93 = arith.addi %92, %c23_i32 : i32
    %94 = arith.index_cast %93 : i32 to index
    %95 = memref.load %arg1[%94] : memref<108xf32, #tpu.memory_space<smem>>
    %c27_i32_23 = arith.constant 27 : i32
    %96 = arith.muli %arg0, %c27_i32_23 : i32
    %c24_i32 = arith.constant 24 : i32
    %97 = arith.addi %96, %c24_i32 : i32
    %98 = arith.index_cast %97 : i32 to index
    %99 = memref.load %arg1[%98] : memref<108xf32, #tpu.memory_space<smem>>
    %c27_i32_24 = arith.constant 27 : i32
    %100 = arith.muli %arg0, %c27_i32_24 : i32
    %c25_i32 = arith.constant 25 : i32
    %101 = arith.addi %100, %c25_i32 : i32
    %102 = arith.index_cast %101 : i32 to index
    %103 = memref.load %arg1[%102] : memref<108xf32, #tpu.memory_space<smem>>
    %c27_i32_25 = arith.constant 27 : i32
    %104 = arith.muli %arg0, %c27_i32_25 : i32
    %c26_i32 = arith.constant 26 : i32
    %105 = arith.addi %104, %c26_i32 : i32
    %106 = arith.index_cast %105 : i32 to index
    %107 = memref.load %arg1[%106] : memref<108xf32, #tpu.memory_space<smem>>
    %c0 = arith.constant 0 : index
    %c0_26 = arith.constant 0 : index
    %108 = vector.load %arg4[%c0, %c0_26] : memref<9x256xf32, #tpu.memory_space<vmem>>, vector<1x256xf32>
    %c1 = arith.constant 1 : index
    %c0_27 = arith.constant 0 : index
    %109 = vector.load %arg4[%c1, %c0_27] : memref<9x256xf32, #tpu.memory_space<vmem>>, vector<1x256xf32>
    %c2 = arith.constant 2 : index
    %c0_28 = arith.constant 0 : index
    %110 = vector.load %arg4[%c2, %c0_28] : memref<9x256xf32, #tpu.memory_space<vmem>>, vector<1x256xf32>
    %c3 = arith.constant 3 : index
    %c0_29 = arith.constant 0 : index
    %111 = vector.load %arg4[%c3, %c0_29] : memref<9x256xf32, #tpu.memory_space<vmem>>, vector<1x256xf32>
    %c4 = arith.constant 4 : index
    %c0_30 = arith.constant 0 : index
    %112 = vector.load %arg4[%c4, %c0_30] : memref<9x256xf32, #tpu.memory_space<vmem>>, vector<1x256xf32>
    %c5 = arith.constant 5 : index
    %c0_31 = arith.constant 0 : index
    %113 = vector.load %arg4[%c5, %c0_31] : memref<9x256xf32, #tpu.memory_space<vmem>>, vector<1x256xf32>
    %c6 = arith.constant 6 : index
    %c0_32 = arith.constant 0 : index
    %114 = vector.load %arg4[%c6, %c0_32] : memref<9x256xf32, #tpu.memory_space<vmem>>, vector<1x256xf32>
    %c7 = arith.constant 7 : index
    %c0_33 = arith.constant 0 : index
    %115 = vector.load %arg4[%c7, %c0_33] : memref<9x256xf32, #tpu.memory_space<vmem>>, vector<1x256xf32>
    %c8 = arith.constant 8 : index
    %c0_34 = arith.constant 0 : index
    %116 = vector.load %arg4[%c8, %c0_34] : memref<9x256xf32, #tpu.memory_space<vmem>>, vector<1x256xf32>
    %117 = tpu.iota {dimensions = array<i32: 0>} : vector<8x1xi32>
    %c0_i32_35 = arith.constant 0 : i32
    %118 = vector.broadcast %c0_i32_35 : i32 to vector<8x1xi32>
    %119 = arith.cmpi sgt, %117, %118 : vector<8x1xi32>
    %120 = arith.extui %119 : vector<8x1xi1> to vector<8x1xi32>
    %121 = arith.sitofp %120 : vector<8x1xi32> to vector<8x1xf32>
    %c7_i32_36 = arith.constant 7 : i32
    %122 = vector.broadcast %c7_i32_36 : i32 to vector<8x1xi32>
    %123 = arith.cmpi slt, %117, %122 : vector<8x1xi32>
    %124 = arith.extui %123 : vector<8x1xi1> to vector<8x1xi32>
    %125 = arith.sitofp %124 : vector<8x1xi32> to vector<8x1xf32>
    %cst = arith.constant 0.000000e+00 : f32
    %126 = vector.broadcast %cst : f32 to vector<1x1xf32>
    %c0_37 = arith.constant 0 : index
    %c0_38 = arith.constant 0 : index
    %c0_39 = arith.constant 0 : index
    %c0_40 = arith.constant 0 : index
    %127 = vector.load %arg5[%c0_37, %c0_38, %c0_39, %c0_40] : memref<2x1x8x256xf32, #tpu.memory_space<vmem>>, vector<1x1x8x256xf32>
    %128 = vector.shape_cast %127 : vector<1x1x8x256xf32> to vector<8x256xf32>
    %cst_41 = arith.constant 0.000000e+00 : f32
    %129 = vector.broadcast %cst_41 : f32 to vector<8x256xf32>
    %cst_42 = arith.constant 0.000000e+00 : f32
    %130 = vector.broadcast %cst_42 : f32 to vector<8x256xf32>
    %cst_43 = arith.constant 0.000000e+00 : f32
    %131 = vector.broadcast %cst_43 : f32 to vector<8x256xf32>
    %c17_i32_44 = arith.constant 17 : i32
    %132 = tpu.dynamic_rotate %128 by %c17_i32_44 dim 1 : vector<8x256xf32>, i32 -> vector<8x256xf32>
    %133 = vector.broadcast %108 : vector<1x256xf32> to vector<8x256xf32>
    %134 = arith.mulf %133, %132 : vector<8x256xf32>
    %135 = vector.broadcast %3 : f32 to vector<8x256xf32>
    %136 = arith.mulf %135, %134 : vector<8x256xf32>
    %137 = arith.addf %129, %136 : vector<8x256xf32>
    %138 = vector.broadcast %39 : f32 to vector<8x256xf32>
    %139 = arith.mulf %138, %134 : vector<8x256xf32>
    %140 = arith.addf %130, %139 : vector<8x256xf32>
    %141 = vector.broadcast %75 : f32 to vector<8x256xf32>
    %142 = arith.mulf %141, %134 : vector<8x256xf32>
    %143 = arith.addf %131, %142 : vector<8x256xf32>
    %c16_i32_45 = arith.constant 16 : i32
    %144 = tpu.dynamic_rotate %128 by %c16_i32_45 dim 1 : vector<8x256xf32>, i32 -> vector<8x256xf32>
    %145 = vector.broadcast %109 : vector<1x256xf32> to vector<8x256xf32>
    %146 = arith.mulf %145, %144 : vector<8x256xf32>
    %147 = vector.broadcast %7 : f32 to vector<8x256xf32>
    %148 = arith.mulf %147, %146 : vector<8x256xf32>
    %149 = arith.addf %137, %148 : vector<8x256xf32>
    %150 = vector.broadcast %43 : f32 to vector<8x256xf32>
    %151 = arith.mulf %150, %146 : vector<8x256xf32>
    %152 = arith.addf %140, %151 : vector<8x256xf32>
    %153 = vector.broadcast %79 : f32 to vector<8x256xf32>
    %154 = arith.mulf %153, %146 : vector<8x256xf32>
    %155 = arith.addf %143, %154 : vector<8x256xf32>
    %c15_i32_46 = arith.constant 15 : i32
    %156 = tpu.dynamic_rotate %128 by %c15_i32_46 dim 1 : vector<8x256xf32>, i32 -> vector<8x256xf32>
    %157 = vector.broadcast %110 : vector<1x256xf32> to vector<8x256xf32>
    %158 = arith.mulf %157, %156 : vector<8x256xf32>
    %159 = vector.broadcast %11 : f32 to vector<8x256xf32>
    %160 = arith.mulf %159, %158 : vector<8x256xf32>
    %161 = arith.addf %149, %160 : vector<8x256xf32>
    %162 = vector.broadcast %47 : f32 to vector<8x256xf32>
    %163 = arith.mulf %162, %158 : vector<8x256xf32>
    %164 = arith.addf %152, %163 : vector<8x256xf32>
    %165 = vector.broadcast %83 : f32 to vector<8x256xf32>
    %166 = arith.mulf %165, %158 : vector<8x256xf32>
    %167 = arith.addf %155, %166 : vector<8x256xf32>
    %c1_i32_47 = arith.constant 1 : i32
    %168 = tpu.dynamic_rotate %128 by %c1_i32_47 dim 1 : vector<8x256xf32>, i32 -> vector<8x256xf32>
    %169 = vector.broadcast %111 : vector<1x256xf32> to vector<8x256xf32>
    %170 = arith.mulf %169, %168 : vector<8x256xf32>
    %171 = vector.broadcast %15 : f32 to vector<8x256xf32>
    %172 = arith.mulf %171, %170 : vector<8x256xf32>
    %173 = arith.addf %161, %172 : vector<8x256xf32>
    %174 = vector.broadcast %51 : f32 to vector<8x256xf32>
    %175 = arith.mulf %174, %170 : vector<8x256xf32>
    %176 = arith.addf %164, %175 : vector<8x256xf32>
    %177 = vector.broadcast %87 : f32 to vector<8x256xf32>
    %178 = arith.mulf %177, %170 : vector<8x256xf32>
    %179 = arith.addf %167, %178 : vector<8x256xf32>
    %180 = vector.broadcast %112 : vector<1x256xf32> to vector<8x256xf32>
    %181 = arith.mulf %180, %128 : vector<8x256xf32>
    %182 = vector.broadcast %19 : f32 to vector<8x256xf32>
    %183 = arith.mulf %182, %181 : vector<8x256xf32>
    %184 = arith.addf %173, %183 : vector<8x256xf32>
    %185 = vector.broadcast %55 : f32 to vector<8x256xf32>
    %186 = arith.mulf %185, %181 : vector<8x256xf32>
    %187 = arith.addf %176, %186 : vector<8x256xf32>
    %188 = vector.broadcast %91 : f32 to vector<8x256xf32>
    %189 = arith.mulf %188, %181 : vector<8x256xf32>
    %190 = arith.addf %179, %189 : vector<8x256xf32>
    %c255_i32 = arith.constant 255 : i32
    %191 = tpu.dynamic_rotate %128 by %c255_i32 dim 1 : vector<8x256xf32>, i32 -> vector<8x256xf32>
    %192 = vector.broadcast %113 : vector<1x256xf32> to vector<8x256xf32>
    %193 = arith.mulf %192, %191 : vector<8x256xf32>
    %194 = vector.broadcast %23 : f32 to vector<8x256xf32>
    %195 = arith.mulf %194, %193 : vector<8x256xf32>
    %196 = arith.addf %184, %195 : vector<8x256xf32>
    %197 = vector.broadcast %59 : f32 to vector<8x256xf32>
    %198 = arith.mulf %197, %193 : vector<8x256xf32>
    %199 = arith.addf %187, %198 : vector<8x256xf32>
    %200 = vector.broadcast %95 : f32 to vector<8x256xf32>
    %201 = arith.mulf %200, %193 : vector<8x256xf32>
    %202 = arith.addf %190, %201 : vector<8x256xf32>
    %c241_i32 = arith.constant 241 : i32
    %203 = tpu.dynamic_rotate %128 by %c241_i32 dim 1 : vector<8x256xf32>, i32 -> vector<8x256xf32>
    %204 = vector.broadcast %114 : vector<1x256xf32> to vector<8x256xf32>
    %205 = arith.mulf %204, %203 : vector<8x256xf32>
    %206 = vector.broadcast %27 : f32 to vector<8x256xf32>
    %207 = arith.mulf %206, %205 : vector<8x256xf32>
    %208 = arith.addf %196, %207 : vector<8x256xf32>
    %209 = vector.broadcast %63 : f32 to vector<8x256xf32>
    %210 = arith.mulf %209, %205 : vector<8x256xf32>
    %211 = arith.addf %199, %210 : vector<8x256xf32>
    %212 = vector.broadcast %99 : f32 to vector<8x256xf32>
    %213 = arith.mulf %212, %205 : vector<8x256xf32>
    %214 = arith.addf %202, %213 : vector<8x256xf32>
    %c240_i32 = arith.constant 240 : i32
    %215 = tpu.dynamic_rotate %128 by %c240_i32 dim 1 : vector<8x256xf32>, i32 -> vector<8x256xf32>
    %216 = vector.broadcast %115 : vector<1x256xf32> to vector<8x256xf32>
    %217 = arith.mulf %216, %215 : vector<8x256xf32>
    %218 = vector.broadcast %31 : f32 to vector<8x256xf32>
    %219 = arith.mulf %218, %217 : vector<8x256xf32>
    %220 = arith.addf %208, %219 : vector<8x256xf32>
    %221 = vector.broadcast %67 : f32 to vector<8x256xf32>
    %222 = arith.mulf %221, %217 : vector<8x256xf32>
    %223 = arith.addf %211, %222 : vector<8x256xf32>
    %224 = vector.broadcast %103 : f32 to vector<8x256xf32>
    %225 = arith.mulf %224, %217 : vector<8x256xf32>
    %226 = arith.addf %214, %225 : vector<8x256xf32>
    %c239_i32 = arith.constant 239 : i32
    %227 = tpu.dynamic_rotate %128 by %c239_i32 dim 1 : vector<8x256xf32>, i32 -> vector<8x256xf32>
    %228 = vector.broadcast %116 : vector<1x256xf32> to vector<8x256xf32>
    %229 = arith.mulf %228, %227 : vector<8x256xf32>
    %230 = vector.broadcast %35 : f32 to vector<8x256xf32>
    %231 = arith.mulf %230, %229 : vector<8x256xf32>
    %232 = arith.addf %220, %231 : vector<8x256xf32>
    %233 = vector.broadcast %71 : f32 to vector<8x256xf32>
    %234 = arith.mulf %233, %229 : vector<8x256xf32>
    %235 = arith.addf %223, %234 : vector<8x256xf32>
    %236 = vector.broadcast %107 : f32 to vector<8x256xf32>
    %237 = arith.mulf %236, %229 : vector<8x256xf32>
    %238 = arith.addf %226, %237 : vector<8x256xf32>
    %c1_i32_48 = arith.constant 1 : i32
    %239 = tpu.dynamic_rotate %232 by %c1_i32_48 dim 0 : vector<8x256xf32>, i32 -> vector<8x256xf32>
    %240 = vector.broadcast %121 : vector<8x1xf32> to vector<8x256xf32>
    %241 = arith.mulf %240, %239 : vector<8x256xf32>
    %242 = arith.addf %235, %241 : vector<8x256xf32>
    %c7_i32_49 = arith.constant 7 : i32
    %243 = tpu.dynamic_rotate %238 by %c7_i32_49 dim 0 : vector<8x256xf32>, i32 -> vector<8x256xf32>
    %244 = vector.broadcast %125 : vector<8x1xf32> to vector<8x256xf32>
    %245 = arith.mulf %244, %243 : vector<8x256xf32>
    %246 = arith.addf %242, %245 : vector<8x256xf32>
    %c0_50 = arith.constant 0 : index
    %c0_51 = arith.constant 0 : index
    %c0_52 = arith.constant 0 : index
    %247 = vector.load %arg7[%c0_50, %c0_51, %c0_52] : memref<2x8x256xf32, #tpu.memory_space<vmem>>, vector<1x8x256xf32>
    %248 = vector.shape_cast %247 : vector<1x8x256xf32> to vector<8x256xf32>
    %249 = vector.shape_cast %246 : vector<8x256xf32> to vector<1x8x256xf32>
    tpu.vector_store %arg7[%c0_50, %c0_51, %c0_52], %249 {strides = array<i32>} : memref<2x8x256xf32, #tpu.memory_space<vmem>>, vector<1x8x256xf32>,
    %250 = vector.shape_cast %246 : vector<8x256xf32> to vector<1x8x256xf32>
    %cst_53 = arith.constant dense<0.000000e+00> : vector<1xf32>
    %251 = vector.multi_reduction <add>, %250, %cst_53 [1, 2] : vector<1x8x256xf32> to vector<1xf32>
    %252 = vector.shape_cast %251 : vector<1xf32> to vector<1x1x1xf32>
    %253 = vector.extract %252[0, 0, 0] : f32 from vector<1x1x1xf32>
    %254 = vector.broadcast %253 : f32 to vector<1x1xf32>
    %255 = arith.addf %126, %254 : vector<1x1xf32>
    %c1_54 = arith.constant 1 : index
    %c0_55 = arith.constant 0 : index
    %c0_56 = arith.constant 0 : index
    %c0_57 = arith.constant 0 : index
    %256 = vector.load %arg5[%c1_54, %c0_55, %c0_56, %c0_57] : memref<2x1x8x256xf32, #tpu.memory_space<vmem>>, vector<1x1x8x256xf32>
    %257 = vector.shape_cast %256 : vector<1x1x8x256xf32> to vector<8x256xf32>
    %cst_58 = arith.constant 0.000000e+00 : f32
    %258 = vector.broadcast %cst_58 : f32 to vector<8x256xf32>
    %cst_59 = arith.constant 0.000000e+00 : f32
    %259 = vector.broadcast %cst_59 : f32 to vector<8x256xf32>
    %cst_60 = arith.constant 0.000000e+00 : f32
    %260 = vector.broadcast %cst_60 : f32 to vector<8x256xf32>
    %c17_i32_61 = arith.constant 17 : i32
    %261 = tpu.dynamic_rotate %257 by %c17_i32_61 dim 1 : vector<8x256xf32>, i32 -> vector<8x256xf32>
    %262 = vector.broadcast %108 : vector<1x256xf32> to vector<8x256xf32>
    %263 = arith.mulf %262, %261 : vector<8x256xf32>
    %264 = vector.broadcast %3 : f32 to vector<8x256xf32>
    %265 = arith.mulf %264, %263 : vector<8x256xf32>
    %266 = arith.addf %258, %265 : vector<8x256xf32>
    %267 = vector.broadcast %39 : f32 to vector<8x256xf32>
    %268 = arith.mulf %267, %263 : vector<8x256xf32>
    %269 = arith.addf %259, %268 : vector<8x256xf32>
    %270 = vector.broadcast %75 : f32 to vector<8x256xf32>
    %271 = arith.mulf %270, %263 : vector<8x256xf32>
    %272 = arith.addf %260, %271 : vector<8x256xf32>
    %c16_i32_62 = arith.constant 16 : i32
    %273 = tpu.dynamic_rotate %257 by %c16_i32_62 dim 1 : vector<8x256xf32>, i32 -> vector<8x256xf32>
    %274 = vector.broadcast %109 : vector<1x256xf32> to vector<8x256xf32>
    %275 = arith.mulf %274, %273 : vector<8x256xf32>
    %276 = vector.broadcast %7 : f32 to vector<8x256xf32>
    %277 = arith.mulf %276, %275 : vector<8x256xf32>
    %278 = arith.addf %266, %277 : vector<8x256xf32>
    %279 = vector.broadcast %43 : f32 to vector<8x256xf32>
    %280 = arith.mulf %279, %275 : vector<8x256xf32>
    %281 = arith.addf %269, %280 : vector<8x256xf32>
    %282 = vector.broadcast %79 : f32 to vector<8x256xf32>
    %283 = arith.mulf %282, %275 : vector<8x256xf32>
    %284 = arith.addf %272, %283 : vector<8x256xf32>
    %c15_i32_63 = arith.constant 15 : i32
    %285 = tpu.dynamic_rotate %257 by %c15_i32_63 dim 1 : vector<8x256xf32>, i32 -> vector<8x256xf32>
    %286 = vector.broadcast %110 : vector<1x256xf32> to vector<8x256xf32>
    %287 = arith.mulf %286, %285 : vector<8x256xf32>
    %288 = vector.broadcast %11 : f32 to vector<8x256xf32>
    %289 = arith.mulf %288, %287 : vector<8x256xf32>
    %290 = arith.addf %278, %289 : vector<8x256xf32>
    %291 = vector.broadcast %47 : f32 to vector<8x256xf32>
    %292 = arith.mulf %291, %287 : vector<8x256xf32>
    %293 = arith.addf %281, %292 : vector<8x256xf32>
    %294 = vector.broadcast %83 : f32 to vector<8x256xf32>
    %295 = arith.mulf %294, %287 : vector<8x256xf32>
    %296 = arith.addf %284, %295 : vector<8x256xf32>
    %c1_i32_64 = arith.constant 1 : i32
    %297 = tpu.dynamic_rotate %257 by %c1_i32_64 dim 1 : vector<8x256xf32>, i32 -> vector<8x256xf32>
    %298 = vector.broadcast %111 : vector<1x256xf32> to vector<8x256xf32>
    %299 = arith.mulf %298, %297 : vector<8x256xf32>
    %300 = vector.broadcast %15 : f32 to vector<8x256xf32>
    %301 = arith.mulf %300, %299 : vector<8x256xf32>
    %302 = arith.addf %290, %301 : vector<8x256xf32>
    %303 = vector.broadcast %51 : f32 to vector<8x256xf32>
    %304 = arith.mulf %303, %299 : vector<8x256xf32>
    %305 = arith.addf %293, %304 : vector<8x256xf32>
    %306 = vector.broadcast %87 : f32 to vector<8x256xf32>
    %307 = arith.mulf %306, %299 : vector<8x256xf32>
    %308 = arith.addf %296, %307 : vector<8x256xf32>
    %309 = vector.broadcast %112 : vector<1x256xf32> to vector<8x256xf32>
    %310 = arith.mulf %309, %257 : vector<8x256xf32>
    %311 = vector.broadcast %19 : f32 to vector<8x256xf32>
    %312 = arith.mulf %311, %310 : vector<8x256xf32>
    %313 = arith.addf %302, %312 : vector<8x256xf32>
    %314 = vector.broadcast %55 : f32 to vector<8x256xf32>
    %315 = arith.mulf %314, %310 : vector<8x256xf32>
    %316 = arith.addf %305, %315 : vector<8x256xf32>
    %317 = vector.broadcast %91 : f32 to vector<8x256xf32>
    %318 = arith.mulf %317, %310 : vector<8x256xf32>
    %319 = arith.addf %308, %318 : vector<8x256xf32>
    %c255_i32_65 = arith.constant 255 : i32
    %320 = tpu.dynamic_rotate %257 by %c255_i32_65 dim 1 : vector<8x256xf32>, i32 -> vector<8x256xf32>
    %321 = vector.broadcast %113 : vector<1x256xf32> to vector<8x256xf32>
    %322 = arith.mulf %321, %320 : vector<8x256xf32>
    %323 = vector.broadcast %23 : f32 to vector<8x256xf32>
    %324 = arith.mulf %323, %322 : vector<8x256xf32>
    %325 = arith.addf %313, %324 : vector<8x256xf32>
    %326 = vector.broadcast %59 : f32 to vector<8x256xf32>
    %327 = arith.mulf %326, %322 : vector<8x256xf32>
    %328 = arith.addf %316, %327 : vector<8x256xf32>
    %329 = vector.broadcast %95 : f32 to vector<8x256xf32>
    %330 = arith.mulf %329, %322 : vector<8x256xf32>
    %331 = arith.addf %319, %330 : vector<8x256xf32>
    %c241_i32_66 = arith.constant 241 : i32
    %332 = tpu.dynamic_rotate %257 by %c241_i32_66 dim 1 : vector<8x256xf32>, i32 -> vector<8x256xf32>
    %333 = vector.broadcast %114 : vector<1x256xf32> to vector<8x256xf32>
    %334 = arith.mulf %333, %332 : vector<8x256xf32>
    %335 = vector.broadcast %27 : f32 to vector<8x256xf32>
    %336 = arith.mulf %335, %334 : vector<8x256xf32>
    %337 = arith.addf %325, %336 : vector<8x256xf32>
    %338 = vector.broadcast %63 : f32 to vector<8x256xf32>
    %339 = arith.mulf %338, %334 : vector<8x256xf32>
    %340 = arith.addf %328, %339 : vector<8x256xf32>
    %341 = vector.broadcast %99 : f32 to vector<8x256xf32>
    %342 = arith.mulf %341, %334 : vector<8x256xf32>
    %343 = arith.addf %331, %342 : vector<8x256xf32>
    %c240_i32_67 = arith.constant 240 : i32
    %344 = tpu.dynamic_rotate %257 by %c240_i32_67 dim 1 : vector<8x256xf32>, i32 -> vector<8x256xf32>
    %345 = vector.broadcast %115 : vector<1x256xf32> to vector<8x256xf32>
    %346 = arith.mulf %345, %344 : vector<8x256xf32>
    %347 = vector.broadcast %31 : f32 to vector<8x256xf32>
    %348 = arith.mulf %347, %346 : vector<8x256xf32>
    %349 = arith.addf %337, %348 : vector<8x256xf32>
    %350 = vector.broadcast %67 : f32 to vector<8x256xf32>
    %351 = arith.mulf %350, %346 : vector<8x256xf32>
    %352 = arith.addf %340, %351 : vector<8x256xf32>
    %353 = vector.broadcast %103 : f32 to vector<8x256xf32>
    %354 = arith.mulf %353, %346 : vector<8x256xf32>
    %355 = arith.addf %343, %354 : vector<8x256xf32>
    %c239_i32_68 = arith.constant 239 : i32
    %356 = tpu.dynamic_rotate %257 by %c239_i32_68 dim 1 : vector<8x256xf32>, i32 -> vector<8x256xf32>
    %357 = vector.broadcast %116 : vector<1x256xf32> to vector<8x256xf32>
    %358 = arith.mulf %357, %356 : vector<8x256xf32>
    %359 = vector.broadcast %35 : f32 to vector<8x256xf32>
    %360 = arith.mulf %359, %358 : vector<8x256xf32>
    %361 = arith.addf %349, %360 : vector<8x256xf32>
    %362 = vector.broadcast %71 : f32 to vector<8x256xf32>
    %363 = arith.mulf %362, %358 : vector<8x256xf32>
    %364 = arith.addf %352, %363 : vector<8x256xf32>
    %365 = vector.broadcast %107 : f32 to vector<8x256xf32>
    %366 = arith.mulf %365, %358 : vector<8x256xf32>
    %367 = arith.addf %355, %366 : vector<8x256xf32>
    %c1_i32_69 = arith.constant 1 : i32
    %368 = tpu.dynamic_rotate %361 by %c1_i32_69 dim 0 : vector<8x256xf32>, i32 -> vector<8x256xf32>
    %369 = vector.broadcast %121 : vector<8x1xf32> to vector<8x256xf32>
    %370 = arith.mulf %369, %368 : vector<8x256xf32>
    %371 = arith.addf %364, %370 : vector<8x256xf32>
    %c7_i32_70 = arith.constant 7 : i32
    %372 = tpu.dynamic_rotate %367 by %c7_i32_70 dim 0 : vector<8x256xf32>, i32 -> vector<8x256xf32>
    %373 = vector.broadcast %125 : vector<8x1xf32> to vector<8x256xf32>
    %374 = arith.mulf %373, %372 : vector<8x256xf32>
    %375 = arith.addf %371, %374 : vector<8x256xf32>
    %c1_71 = arith.constant 1 : index
    %c0_72 = arith.constant 0 : index
    %c0_73 = arith.constant 0 : index
    %376 = vector.load %arg7[%c1_71, %c0_72, %c0_73] : memref<2x8x256xf32, #tpu.memory_space<vmem>>, vector<1x8x256xf32>
    %377 = vector.shape_cast %376 : vector<1x8x256xf32> to vector<8x256xf32>
    %378 = vector.shape_cast %375 : vector<8x256xf32> to vector<1x8x256xf32>
    tpu.vector_store %arg7[%c1_71, %c0_72, %c0_73], %378 {strides = array<i32>} : memref<2x8x256xf32, #tpu.memory_space<vmem>>, vector<1x8x256xf32>,
    %379 = vector.shape_cast %375 : vector<8x256xf32> to vector<1x8x256xf32>
    %cst_74 = arith.constant dense<0.000000e+00> : vector<1xf32>
    %380 = vector.multi_reduction <add>, %379, %cst_74 [1, 2] : vector<1x8x256xf32> to vector<1xf32>
    %381 = vector.shape_cast %380 : vector<1xf32> to vector<1x1x1xf32>
    %382 = vector.extract %381[0, 0, 0] : f32 from vector<1x1x1xf32>
    %383 = vector.broadcast %382 : f32 to vector<1x1xf32>
    %384 = arith.addf %255, %383 : vector<1x1xf32>
    %cst_75 = arith.constant 2.44140625E-4 : f32
    %385 = vector.broadcast %cst_75 : f32 to vector<1x1xf32>
    %386 = arith.mulf %384, %385 : vector<1x1xf32>
    %cst_76 = arith.constant 0.000000e+00 : f32
    %387 = vector.broadcast %cst_76 : f32 to vector<1x1xf32>
    %c0_77 = arith.constant 0 : index
    %c0_78 = arith.constant 0 : index
    %c0_79 = arith.constant 0 : index
    %388 = vector.load %arg7[%c0_77, %c0_78, %c0_79] : memref<2x8x256xf32, #tpu.memory_space<vmem>>, vector<1x8x256xf32>
    %389 = vector.shape_cast %388 : vector<1x8x256xf32> to vector<8x256xf32>
    %390 = vector.broadcast %386 : vector<1x1xf32> to vector<8x256xf32>
    %391 = arith.subf %389, %390 : vector<8x256xf32>
    %392 = vector.broadcast %112 : vector<1x256xf32> to vector<8x256xf32>
    %393 = arith.mulf %391, %392 : vector<8x256xf32>
    %394 = arith.mulf %393, %393 : vector<8x256xf32>
    %395 = vector.shape_cast %394 : vector<8x256xf32> to vector<1x8x256xf32>
    %cst_80 = arith.constant dense<0.000000e+00> : vector<1xf32>
    %396 = vector.multi_reduction <add>, %395, %cst_80 [1, 2] : vector<1x8x256xf32> to vector<1xf32>
    %397 = vector.shape_cast %396 : vector<1xf32> to vector<1x1x1xf32>
    %398 = vector.extract %397[0, 0, 0] : f32 from vector<1x1x1xf32>
    %399 = vector.broadcast %398 : f32 to vector<1x1xf32>
    %400 = arith.addf %387, %399 : vector<1x1xf32>
    %c1_81 = arith.constant 1 : index
    %c0_82 = arith.constant 0 : index
    %c0_83 = arith.constant 0 : index
    %401 = vector.load %arg7[%c1_81, %c0_82, %c0_83] : memref<2x8x256xf32, #tpu.memory_space<vmem>>, vector<1x8x256xf32>
    %402 = vector.shape_cast %401 : vector<1x8x256xf32> to vector<8x256xf32>
    %403 = vector.broadcast %386 : vector<1x1xf32> to vector<8x256xf32>
    %404 = arith.subf %402, %403 : vector<8x256xf32>
    %405 = vector.broadcast %112 : vector<1x256xf32> to vector<8x256xf32>
    %406 = arith.mulf %404, %405 : vector<8x256xf32>
    %407 = arith.mulf %406, %406 : vector<8x256xf32>
    %408 = vector.shape_cast %407 : vector<8x256xf32> to vector<1x8x256xf32>
    %cst_84 = arith.constant dense<0.000000e+00> : vector<1xf32>
    %409 = vector.multi_reduction <add>, %408, %cst_84 [1, 2] : vector<1x8x256xf32> to vector<1xf32>
    %410 = vector.shape_cast %409 : vector<1xf32> to vector<1x1x1xf32>
    %411 = vector.extract %410[0, 0, 0] : f32 from vector<1x1x1xf32>
    %412 = vector.broadcast %411 : f32 to vector<1x1xf32>
    %413 = arith.addf %400, %412 : vector<1x1xf32>
    %cst_85 = arith.constant 2.44140625E-4 : f32
    %414 = vector.broadcast %cst_85 : f32 to vector<1x1xf32>
    %415 = arith.mulf %413, %414 : vector<1x1xf32>
    %416 = arith.index_cast %arg0 : i32 to index
    %417 = memref.load %arg2[%416] : memref<4xf32, #tpu.memory_space<smem>>
    %cst_86 = arith.constant 9.99999974E-6 : f32
    %418 = vector.broadcast %cst_86 : f32 to vector<1x1xf32>
    %419 = arith.addf %415, %418 : vector<1x1xf32>
    %420 = math.rsqrt %419 : vector<1x1xf32>
    %421 = vector.broadcast %417 : f32 to vector<1x1xf32>
    %422 = arith.mulf %421, %420 : vector<1x1xf32>
    %423 = arith.index_cast %arg0 : i32 to index
    %424 = memref.load %arg3[%423] : memref<4xf32, #tpu.memory_space<smem>>
    %425 = arith.mulf %386, %422 : vector<1x1xf32>
    %426 = vector.broadcast %424 : f32 to vector<1x1xf32>
    %427 = arith.subf %426, %425 : vector<1x1xf32>
    %c0_87 = arith.constant 0 : index
    %c0_88 = arith.constant 0 : index
    %c0_89 = arith.constant 0 : index
    %428 = vector.load %arg7[%c0_87, %c0_88, %c0_89] : memref<2x8x256xf32, #tpu.memory_space<vmem>>, vector<1x8x256xf32>
    %429 = vector.shape_cast %428 : vector<1x8x256xf32> to vector<8x256xf32>
    %430 = vector.broadcast %422 : vector<1x1xf32> to vector<8x256xf32>
    %431 = arith.mulf %429, %430 : vector<8x256xf32>
    %432 = vector.broadcast %427 : vector<1x1xf32> to vector<8x256xf32>
    %433 = arith.addf %431, %432 : vector<8x256xf32>
    %c0_90 = arith.constant 0 : index
    %c0_91 = arith.constant 0 : index
    %c0_92 = arith.constant 0 : index
    %c0_93 = arith.constant 0 : index
    %434 = vector.load %arg5[%c0_90, %c0_91, %c0_92, %c0_93] : memref<2x1x8x256xf32, #tpu.memory_space<vmem>>, vector<1x1x8x256xf32>
    %435 = vector.shape_cast %434 : vector<1x1x8x256xf32> to vector<8x256xf32>
    %436 = arith.maximumf %435, %433 : vector<8x256xf32>
    %c0_94 = arith.constant 0 : index
    %c0_95 = arith.constant 0 : index
    %c0_96 = arith.constant 0 : index
    %c0_97 = arith.constant 0 : index
    %437 = vector.load %arg6[%c0_94, %c0_95, %c0_96, %c0_97] : memref<2x1x8x256xf32, #tpu.memory_space<vmem>>, vector<1x1x8x256xf32>
    %438 = vector.shape_cast %437 : vector<1x1x8x256xf32> to vector<8x256xf32>
    %439 = vector.shape_cast %436 : vector<8x256xf32> to vector<1x1x8x256xf32>
    tpu.vector_store %arg6[%c0_94, %c0_95, %c0_96, %c0_97], %439 {strides = array<i32>} : memref<2x1x8x256xf32, #tpu.memory_space<vmem>>, vector<1x1x8x256xf32>,
    %c1_98 = arith.constant 1 : index
    %c0_99 = arith.constant 0 : index
    %c0_100 = arith.constant 0 : index
    %440 = vector.load %arg7[%c1_98, %c0_99, %c0_100] : memref<2x8x256xf32, #tpu.memory_space<vmem>>, vector<1x8x256xf32>
    %441 = vector.shape_cast %440 : vector<1x8x256xf32> to vector<8x256xf32>
    %442 = vector.broadcast %422 : vector<1x1xf32> to vector<8x256xf32>
    %443 = arith.mulf %441, %442 : vector<8x256xf32>
    %444 = vector.broadcast %427 : vector<1x1xf32> to vector<8x256xf32>
    %445 = arith.addf %443, %444 : vector<8x256xf32>
    %c1_101 = arith.constant 1 : index
    %c0_102 = arith.constant 0 : index
    %c0_103 = arith.constant 0 : index
    %c0_104 = arith.constant 0 : index
    %446 = vector.load %arg5[%c1_101, %c0_102, %c0_103, %c0_104] : memref<2x1x8x256xf32, #tpu.memory_space<vmem>>, vector<1x1x8x256xf32>
    %447 = vector.shape_cast %446 : vector<1x1x8x256xf32> to vector<8x256xf32>
    %448 = arith.maximumf %447, %445 : vector<8x256xf32>
    %c1_105 = arith.constant 1 : index
    %c0_106 = arith.constant 0 : index
    %c0_107 = arith.constant 0 : index
    %c0_108 = arith.constant 0 : index
    %449 = vector.load %arg6[%c1_105, %c0_106, %c0_107, %c0_108] : memref<2x1x8x256xf32, #tpu.memory_space<vmem>>, vector<1x1x8x256xf32>
    %450 = vector.shape_cast %449 : vector<1x1x8x256xf32> to vector<8x256xf32>
    %451 = vector.shape_cast %448 : vector<8x256xf32> to vector<1x1x8x256xf32>
    tpu.vector_store %arg6[%c1_105, %c0_106, %c0_107, %c0_108], %451 {strides = array<i32>} : memref<2x1x8x256xf32, #tpu.memory_space<vmem>>, vector<1x1x8x256xf32>,
    return
  }
  func.func @transform_0(%arg0: i32) -> i32 {
    %c0_i32 = arith.constant 0 : i32
    %c0_i32_0 = arith.constant 0 : i32
    return %c0_i32 : i32
  }
  func.func @transform_1(%arg0: i32) -> i32 {
    %c0_i32 = arith.constant 0 : i32
    %c0_i32_0 = arith.constant 0 : i32
    return %c0_i32 : i32
  }
  func.func @transform_2(%arg0: i32) -> i32 {
    %c0_i32 = arith.constant 0 : i32
    %c0_i32_0 = arith.constant 0 : i32
    return %c0_i32 : i32
  }
  func.func @transform_3(%arg0: i32) -> (i32, i32) {
    %c0_i32 = arith.constant 0 : i32
    %c0_i32_0 = arith.constant 0 : i32
    %c0_i32_1 = arith.constant 0 : i32
    return %c0_i32, %c0_i32_0 : i32, i32
  }
  func.func @transform_4(%arg0: i32) -> (i32, i32, i32, i32) {
    %c0_i32 = arith.constant 0 : i32
    %c0_i32_0 = arith.constant 0 : i32
    %c0_i32_1 = arith.constant 0 : i32
    %c0_i32_2 = arith.constant 0 : i32
    return %c0_i32, %arg0, %c0_i32_0, %c0_i32_1 : i32, i32, i32, i32
  }
  func.func @transform_5(%arg0: i32) -> (i32, i32, i32, i32) {
    %c0_i32 = arith.constant 0 : i32
    %c0_i32_0 = arith.constant 0 : i32
    %c0_i32_1 = arith.constant 0 : i32
    %c0_i32_2 = arith.constant 0 : i32
    return %c0_i32, %arg0, %c0_i32_0, %c0_i32_1 : i32, i32, i32, i32
  }
}

</mosaic_0001>

<bundles_post_ra>
// kernel: tpu_custom_call.1
= control target key start
LH: loop header
LB: loop body
LE: loop exit
PB: predicated region body
PF: predicated region fallthrough
CT: control target
= control target key end

     0   :  { %s2335_s0 = inlined_call_operand.hbm [shape: f32[108], index: 0, kind: input, shape index: {}]   ;;  %s2336_s1 = inlined_call_operand.vmem [shape: f32[4], index: 1, kind: input, shape index: {}]   ;;  %s2337_s2 = inlined_call_operand.vmem [shape: f32[4], index: 2, kind: input, shape index: {}]   ;;  %s2338_s3 = inlined_call_operand.hbm [shape: f32[9,256], index: 3, kind: input, shape index: {}]   ;;  %s2339_s4 = inlined_call_operand.hbm [shape: f32[2,4,8,256], index: 4, kind: input, shape index: {}]   ;;  %s2340_s5 = inlined_call_operand.hbm [shape: f32[2,4,8,256], index: 5, kind: output, shape index: {}]  }
   0x1   :  { %2374 = sst [smem:[#allocation51_spill]] %s2335_s0 }
   0x2   :  { %2375 = sst [smem:[#allocation52_spill]] %s2336_s1 }
   0x3   :  { %2376 = sst [smem:[#allocation53_spill]] %s2337_s2 }
   0x4   :  { %2377 = sst [smem:[#allocation54_spill]] %s2338_s3 }
   0x5   :  { %2378 = sst [smem:[#allocation55_spill]] %s2339_s4 }
   0x6   :  { %10 = vsyncpa [#allocation6], 0 }
   0x7   :  { %11 = vsyncpa [#allocation7], 0 }
   0x8   :  { %12 = vsyncpa [#allocation10], 0 }
   0x9   :  { %13 = vsyncpa [#allocation4], 0 }
   0xa   :  { %14 = vsyncpa [#allocation13], 0 }
   0xb   :  { %16 = vsyncpa [#allocation13 + $0x1], 0 }
   0xc   :  { %17 = vsyncpa [#allocation5], 0 }
   0xd   :  { %19 = vsyncpa [#allocation5 + $0x1], 0  ;;  %s1502_s18 = smov 0   ;;  %s1504_s19 = smov 0  }
   0xe   :  { %s1506_s20 = smov 0   ;;  %s1508_s21 = smov 0  }
   0xf LB: > { %2379 = sst [smem:[#allocation21_spill]] %s1442_s19  ;;  %s1523_s22 = sadd.s32 4294967295, %s1450_s21   ;;  %s1450_s21 = sphi %s1508_s21, %s2461_s21   ;;  %s1446_s20 = sphi %s1506_s20, %s2464_s20   ;;  %s1442_s19 = sphi %s1504_s19, %s2463_s19   ;;  %s1438_s18 = sphi %s1502_s18, %s2462_s18  }
  0x10   : > { %2380 = sst [smem:[#allocation22_spill]] %s1446_s20  ;;  %s1124_s23 = sadd.s32 4294967294, %s1450_s21  }
  0x11   : > { %p129_p0 = scmp.ne.s32.totalorder %s1442_s19, %s1438_s18  ;;  %p2341_p1 = scmp.eq.s32.totalorder %s1523_s22, 0 }
  0x12   : > { %p159_p3 = scmp.eq.s32.totalorder %s1124_s23, 3  ;;  %p1125_p5 = scmp.ge.s32.totalorder %s1450_s21, 1 }
  0x13   : > { %p1532_p4 = por %p2341_p1, %p129_p0  ;;  %p166_p7 = scmp.lt.s32.totalorder %s1450_s21, 5 }
  0x14   : > { %p1537_p6 = por %p159_p3, %p129_p0  ;;  %s2384_s1 = sld [smem:[#allocation52_spill]] }
  0x15   : > { %s2381_s24 = scalar_select %p1532_p4, 1, 0 }
  0x16   : > { %s2382_s25 = scalar_select %p1537_p6, 1, 0 }
  0x17   : > { %p1542_p8 = pnand %p1125_p5, %p166_p7  ;;  %s2385_s2 = sld [smem:[#allocation53_spill]] }
  0x18   : > { %s1452_s9 = smov [#allocation11]   ;;  %s2387_s0 = sld [smem:[#allocation51_spill]] }
  0x19   : > { %s2383_s26 = scalar_select %p1542_p8, 1, 0 }
  0x1a   : > { %s188_s29 = sshll.u32 %s2384_s1, 4  ;;  %p1184_p9 = pneg %p1542_p8  ;;  %s189_s29 = int_to_ptr.vmem [resolvable:$true] %s188_s29 }
  0x1b   : > { %s1562_s10 = sshll.u32 %s1452_s9, 4  ;;  %s210_s10 = int_to_ptr.vmem [resolvable:$true] %s1562_s10 }
  0x1c   : > { %p1556_p10 = pnand %p1184_p9, %p2341_p1 }
  0x1d   : > { %s199_s7 = sshll.u32 %s2385_s2, 4  ;;  %s1560_s7 = int_to_ptr.vmem [resolvable:$true] %s199_s7 }
  0x1e   : > { %s1267_s13 = scalar_lea.hbm %s2387_s0, 16  ;;  %p1572_p12 = pneg %p1556_p10 }
  0x1f   : > { %p1268_p11 = scmp.ne.s32.totalorder %s2387_s0, %s1267_s13  ;;  %p1274_p3 = scmp.lt.u32.totalorder %s1267_s13, %s2387_s0 }
  0x21   : > { %p1270_p13 = pnand %p1572_p12, %p1268_p11 }
  0x23   : > { %p1271_p0 = pneg %p1270_p13 }
  0x25   : > { %p1276_p5 = pnand %p1274_p3, %p1271_p0 }
  0x27   : > { %1279 = shalt.err (!%p1276_p5)
}
  0x28   : > { %s1453_s27 = smov [#allocation3]   ;;  %s1280_s6 = scalar_lea.vmem %s189_s29, 16 }
  0x29   : > { %1187 = dma.hbm_to_smem (!%p1556_p10), %s2387_s0, 16, %s1453_s27, [#allocation6]  }
  0x2a   : > { %p1281_p7 = scmp.ne.s32.totalorder %s189_s29, %s1280_s6  ;;  %p1288_p13 = scmp.lt.s32.totalorder %s189_s29, %s189_s29 }
  0x2b   : > { %p1289_p1 = scmp.lt.s32.totalorder %s1280_s6, %s1280_s6 }
  0x2c   : > { %p1283_p9 = pnand %p1281_p7, %p1572_p12 }
  0x2d   : > { %p1290_p2 = por %p1289_p1, %p1288_p13 }
  0x2e   : > { %p1284_p11 = pneg %p1283_p9 }
  0x30   : > { %p1291_p6 = pnand %p1290_p2, %p1284_p11 }
  0x32   : > { %1294 = shalt.err (!%p1291_p6)
}
  0x33   : > { %s1454_s9 = smov [#allocation8]   ;;  %s1295_s11 = scalar_lea.vmem %s1560_s7, 16 }
  0x34   : > { %1190 = dma.vmem_to_smem (!%p1556_p10), %s189_s29, 16, %s1454_s9, [#allocation7]  }
  0x35   : > { %p1296_p0 = scmp.ne.s32.totalorder %s1560_s7, %s1295_s11  ;;  %p1303_p7 = scmp.lt.s32.totalorder %s1560_s7, %s1560_s7 }
  0x36   : > { %p1304_p9 = scmp.lt.s32.totalorder %s1295_s11, %s1295_s11 }
  0x37   : > { %p1298_p3 = pnand %p1296_p0, %p1572_p12 }
  0x38   : > { %p1305_p4 = por %p1304_p9, %p1303_p7 }
  0x39   : > { %p1299_p5 = pneg %p1298_p3 }
  0x3b   : > { %p1306_p1 = pnand %p1305_p4, %p1299_p5 }
  0x3d   : > { %1309 = shalt.err (!%p1306_p1)
}
  0x3e   : > { %s1455_s12 = smov [#allocation9]   ;;  %s2389_s3 = sld [smem:[#allocation54_spill]] }
  0x3f   : > { %1193 = dma.vmem_to_smem (!%p1556_p10), %s1560_s7, 16, %s1455_s12, [#allocation10]  }
  0x44   : > { %s1310_s14 = scalar_lea.hbm %s2389_s3, 512 }
  0x45   : > { %p1311_p2 = scmp.ne.s32.totalorder %s2389_s3, %s1310_s14  ;;  %p1317_p11 = scmp.lt.u32.totalorder %s1310_s14, %s2389_s3 }
  0x47   : > { %p1313_p6 = pnand %p1311_p2, %p1572_p12 }
  0x49   : > { %p1314_p4 = pneg %p1313_p6 }
  0x4b   : > { %p1319_p13 = pnand %p1317_p11, %p1314_p4 }
  0x4d   : > { %1322 = shalt.err (!%p1319_p13)
}
  0x4e   : > { %s1323_s28 = scalar_lea.vmem %s210_s10, 512  ;;  %p1331_p7 = scmp.lt.s32.totalorder %s210_s10, %s210_s10 }
  0x4f   : > { %p1324_p0 = scmp.ne.s32.totalorder %s210_s10, %s1323_s28  ;;  %p1332_p9 = scmp.lt.s32.totalorder %s1323_s28, %s1323_s28 }
  0x51   : > { %p1326_p3 = pnand %p1324_p0, %p1572_p12  ;;  %p1333_p1 = por %p1332_p9, %p1331_p7 }
  0x53   : > { %p1327_p5 = pneg %p1326_p3 }
  0x55   : > { %p1334_p8 = pnand %p1333_p1, %p1327_p5 }
  0x57   : > { %1337 = shalt.err (!%p1334_p8)
}
  0x58   : > { %s1456_s7 = smov 256   ;;  %s1457_s16 = smov 16  }
  0x59   : > { %1196 = dma.hbm_to_vmem [thread:$0]  (!%p1556_p10), %s2389_s3, 512, %s210_s10, [#allocation4], %s1456_s7, %s1456_s7, %s1457_s16  }
  0x5a   : > { %s1622_s9 = sadd.s32 1, %s1450_s21   ;;  %s116_s12 = sadd.s32 1, %s1446_s20 }
  0x5b   : > { %2390 = sst [smem:[#allocation23_spill]] %s1622_s9  ;;  %s113_s11 = ssub.s32 %s1450_s21, %s1622_s9 }
  0x5c   : > { %p114_p8 = scmp.eq.s32.totalorder %s113_s11, 0  ;;  %p123_p12 = scmp.ne.s32.totalorder %s1446_s20, %s1442_s19 }
  0x5d   : > { %p124_p2 = scmp.eq.s32.totalorder %s1450_s21, 0  ;;  %p2392_p4 = scmp.eq.s32.totalorder %s1523_s22, 3 }
  0x5e   : > { %s1631_s29 = scalar_select %p114_p8, %s1446_s20, %s116_s12  }
  0x5f   : > { %p125_p6 = por %p124_p2, %p123_p12  ;;  %p1635_p11 = por %p2392_p4, %p123_p12 }
  0x60   : > { %2391 = sst [smem:[#allocation24_spill]] %s1631_s29  ;;  %p1209_p13 = scmp.lt.s32.totalorder %s1450_s21, 4 }
  0x61   : > { %s223_s13 = sand.u32 1, %s1446_s20   ;;  %s1154_s10 = sshll.u32 %s1450_s21, 8 }
  0x62   : > { %s1131_s14 = sshll.u32 %s223_s13, 5  ;;  %s2394_s4 = sld [smem:[#allocation55_spill]] }
  0x63   : > { %s227_s27 = scalar_lea.vmem [#allocation12], %s1131_s14  ;;  %p1649_p10 = pnand %p1209_p13, %p125_p6 }
  0x64   : > { %s234_s28 = sshll.u32 %s227_s27, 4  ;;  %s1653_s6 = scalar_lea.sflag [#allocation13], %s223_s13  ;;  %s1647_s28 = int_to_ptr.vmem [resolvable:$true] %s234_s28 }
  0x65   : > { %p1340_p3 = pneg %p1649_p10 }
  0x68   : > { %s1645_s23 = scalar_lea.hbm %s2394_s4, %s1154_s10  ;;  %s1343_s10 = scalar_lea.hbm %s2394_s4, 2048 }
  0x69   : > { %s1338_s11 = scalar_lea.hbm %s1645_s23, 512  ;;  %p1344_p9 = scmp.lt.u32.totalorder %s1645_s23, %s2394_s4 }
  0x6a   : > { %p1339_p0 = scmp.ne.s32.totalorder %s1645_s23, %s1338_s11  ;;  %p1345_p1 = scmp.lt.u32.totalorder %s1343_s10, %s1338_s11 }
  0x6b   : > { %p1347_p12 = scmp.lt.u32.totalorder %s1338_s11, %s1645_s23 }
  0x6c   : > { %p1341_p5 = pnand %p1340_p3, %p1339_p0  ;;  %p1346_p8 = por %p1345_p1, %p1344_p9 }
  0x6e   : > { %p1342_p7 = pneg %p1341_p5  ;;  %p1348_p2 = por %p1347_p12, %p1346_p8 }
  0x70   : > { %p1349_p6 = pnand %p1348_p2, %p1342_p7 }
  0x72   : > { %1352 = shalt.err (!%p1349_p6)
}
  0x73   : > { %s1353_s13 = scalar_lea.vmem %s1647_s28, 512  ;;  %s1458_s27 = smov [#allocation12]  }
  0x74   : > { %p1354_p4 = scmp.ne.s32.totalorder %s1647_s28, %s1353_s13  ;;  %s1358_s12 = sshll.u32 %s1458_s27, 4  ;;  %s1359_s12 = int_to_ptr.vmem [resolvable:$false] %s1358_s12 }
  0x75   : > { %s1360_s14 = scalar_lea.vmem %s1359_s12, 1024  ;;  %p1361_p5 = scmp.lt.s32.totalorder %s1647_s28, %s1359_s12 }
  0x76   : > { %p1356_p13 = pnand %p1354_p4, %p1340_p3  ;;  %p1362_p9 = scmp.lt.s32.totalorder %s1360_s14, %s1353_s13 }
  0x78   : > { %p1357_p0 = pneg %p1356_p13  ;;  %p1363_p1 = por %p1362_p9, %p1361_p5 }
  0x7a   : > { %p1364_p8 = pnand %p1363_p1, %p1357_p0 }
  0x7c   : > { %1367 = shalt.err (!%p1364_p8)
}
  0x7d   : > { %s1459_s11 = smov 1024   ;;  %p2396_p3 = scmp.ne.s32.totalorder %s2383_s26, 0 }
  0x7e   : > { %1200 = dma.hbm_to_vmem [thread:$0]  (!%p1649_p10), %s1645_s23, 512, %s1647_s28, %s1653_s6, %s1459_s11, %s1456_s7, %s1457_s16  }
  0x7f   : > { %246 = sbr.rel (%p2396_p3) target bundleno = 821 (0x335), region = 40 }
  0x86   : > { %p2397_p7 = scmp.eq.s32.totalorder %s1523_s22, 0 }
  0x88   : > { %1413 = dma.done.wait (%p2397_p7), [#allocation6], 16   ;;  %p2398_p12 = pmov %p2397_p7 }
  0x89   : > { %p2399_p2 = pmov %p2397_p7 }
  0x8a   : > { %1415 = vsyncadd (%p2398_p12), [#allocation6], 4294967280 }
  0x8b   : > { %1417 = dma.done.wait (%p2399_p2), [#allocation7], 16   ;;  %p2400_p6 = pmov %p2399_p2 }
  0x8c   : > { %p2401_p4 = pmov %p2399_p2 }
  0x8d   : > { %1419 = vsyncadd (%p2400_p6), [#allocation7], 4294967280 }
  0x8e   : > { %1421 = dma.done.wait (%p2401_p4), [#allocation10], 16   ;;  %p2402_p10 = pmov %p2399_p2 }
  0x8f   : > { %p2403_p13 = pmov %p2399_p2 }
  0x90   : > { %1423 = vsyncadd (%p2402_p10), [#allocation10], 4294967280 }
  0x91   : > { %1425 = dma.done.wait (%p2403_p13), [#allocation4], 512   ;;  %p2404_p0 = pmov %p2399_p2 }
  0x92   : > { %s1702_s26 = sand.u32 1, %s1442_s19   ;;  %p2405_p5 = scmp.ne.s32.totalorder %s2381_s24, 0 }
  0x93   : > { %1427 = vsyncadd (%p2404_p0), [#allocation4], 4294966784  ;;  %s2345_s7 = sshll.u32 %s1702_s26, 5  ;;  %s265_s16 = scalar_lea.sflag [#allocation13], %s1702_s26 }
  0x94   : > { %s1708_s23 = scalar_lea.vmem [#allocation12], %s2345_s7 }
  0x95   : > { %1429 = dma.done.wait (%p2405_p5), %s265_s16, 512  }
  0x96   : > { %1431 = vsyncadd (%p2405_p5), %s265_s16, 4294966784 }
  0x97   : > { %273 = sfence }
  0x98   : > { %v1715_v0 = vld [vmem:[%s1708_s23] sm:$0xff]  ;;  %s2344_s28 = smov 16   ;;  %s1461_s30 = smov 17   ;;  %v1721_v1 = vld [vmem:[%s1708_s23 + $0x8] sm:$0xff]  ;;  %v1727_v2 = vld [vmem:[%s1708_s23 + $0x18] sm:$0xff]  ;;  %v367_v4 = vlaneseq }
  0x99   : > { %414 = vrot.lane.b32.xlu1 %v1715_v0, %s2344_s28  ;;  %377 = vrot.lane.b32.xlu0 %v1715_v0, %s1461_s30  ;;  %v1730_v3 = vld [vmem:[%s1708_s23 + $0x10] sm:$0xff]  ;;  %s1462_s24 = smov 15   ;;  %s1463_s6 = smov 1   ;;  %v352_v6 = vld [vmem:[#allocation11 + $0x1] ss:$8 sm:$0x3] }
  0x9a   : > { %s1464_s10 = smov 127   ;;  %s1465_s15 = smov 113   ;;  %v1792_v5 = vshrl.u32 %v367_v4, 7  ;;  %v358_v7 = vld [vmem:[#allocation11 + $0x4] ss:$8 sm:$0x3] }
  0x9b   : > { %s1466_s17 = smov 112   ;;  %s1467_s13 = smov 111   ;;  %v1815_v10 = vand.u32 127, %v367_v4  ;;  %v350_v11 = vld [vmem:[#allocation11] ss:$8 sm:$0x3] }
  0x9c   : > { %s1763_s27 = smul.u32 27, %s1523_s22  ;;  %v1807_v8 = vsub.s32 0, %v1792_v5  ;;  %v1810_v9 = vsub.s32 1, %v1792_v5  ;;  %v354_v12 = vld [vmem:[#allocation11 + $0x2] ss:$8 sm:$0x3] }
  0x9d   : > { %416 = vrot.lane.b32.xlu1 %v1721_v1, %s2344_s28  ;;  %379 = vrot.lane.b32.xlu0 %v1721_v1, %s1461_s30  ;;  %v356_v14 = vld [vmem:[#allocation11 + $0x3] ss:$8 sm:$0x3]  ;;  %vm418_vm0 = vcmp.lt.s32.totalorder %v1815_v10, 16  ;;  %vm383_vm1 = vcmp.lt.s32.totalorder %v1815_v10, 17  ;;  %vm453_vm2 = vcmp.lt.s32.totalorder %v1815_v10, 15 }
  0x9e   : > { %s298_s12 = sadd.s32 1, %s1763_s27  ;;  %s316_s14 = sadd.s32 10, %s1763_s27  ;;  %v1824_v13 = vrot.slane %v358_v7, %v1807_v8  ;;  %v1829_v15 = vrot.slane %v358_v7, %v1810_v9  ;;  %v1833_v16 = vrot.slane %v352_v6, %v1807_v8  ;;  %v1836_v17 = vrot.slane %v352_v6, %v1810_v9  ;;  %v360_v35 = vld [vmem:[#allocation11 + $0x5] ss:$8 sm:$0x3] }
  0x9f   : > { %s1767_s11 = sld [smem:[#allocation3 + %s298_s12]]  ;;  %s334_s16 = sadd.s32 19, %s1763_s27  ;;  %v1839_v18 = vrot.slane %v350_v11, %v1807_v8  ;;  %v1842_v19 = vrot.slane %v350_v11, %v1810_v9  ;;  %v1856_v22 = vrot.slane %v354_v12, %v1807_v8  ;;  %v1859_v23 = vrot.slane %v354_v12, %v1810_v9  ;;  %v362_v55 = vld [vmem:[#allocation11 + $0x6] ss:$8 sm:$0x3] }
  0xa0   : > { %s318_s12 = sadd.s32 11, %s1763_s27  ;;  %s336_s7 = sadd.s32 20, %s1763_s27  ;;  %2406 = vst [vmem:[#allocation25_spill] sm:$0xff] %v1824_v13  ;;  %2407 = vst [vmem:[#allocation26_spill] sm:$0xff] %v1829_v15  ;;  %v1870_v26 = vrot.slane %v356_v14, %v1807_v8  ;;  %v530_v27 = vmul.f32 %v1824_v13, %v1715_v0  ;;  %v1881_v29 = vrot.slane %v356_v14, %v1810_v9  ;;  %vm369_vm3 = vcmp.gt.s32.totalorder %v1792_v5, 0 }
  0xa1   : > { %718 = vrot.lane.b32.xlu1 %v1727_v2, %s1461_s30  ;;  %716 = vrot.lane.b32.xlu0 %v1730_v3, %s1461_s30  ;;  %s1770_s30 = sld [smem:[#allocation3 + %s316_s14]]  ;;  %s302_s0 = sadd.s32 3, %s1763_s27  ;;  %v531_v30 = vmul.f32 %v1829_v15, %v1721_v1  ;;  %v796_v39 = vmul.f32 %v1730_v3, %v1824_v13  ;;  %v797_v40 = vmul.f32 %v1727_v2, %v1829_v15  ;;  %vm372_vm4 = vcmp.lt.s32.totalorder %v1792_v5, 7 }
  0xa2   : > { %s1789_s1 = sld [smem:[#allocation3 + %s318_s12]]  ;;  %s320_s2 = sadd.s32 12, %s1763_s27  ;;  %v1931_v50 = vrot.slane %v360_v35, %v1807_v8  ;;  %v1940_v52 = vrot.slane %v360_v35, %v1810_v9  ;;  %v1972_v4 = vrot.slane %v362_v55, %v1810_v9  ;;  %vm488_vm5 = vcmp.lt.s32.totalorder %v1815_v10, 1 }
  0xa3   : > { %s304_s3 = sadd.s32 4, %s1763_s27  ;;  %s322_s4 = sadd.s32 13, %s1763_s27  ;;  %vm551_vm6 = vcmp.lt.s32.totalorder %v1815_v10, 127  ;;  %vm586_vm7 = vcmp.lt.s32.totalorder %v1815_v10, 113  ;;  %vm621_vm8 = vcmp.lt.s32.totalorder %v1815_v10, 112  ;;  %vm656_vm9 = vcmp.lt.s32.totalorder %v1815_v10, 111 }
  0xa4   : > { %s1800_s29 = sld [smem:[#allocation3 + %s320_s2]]  ;;  %s324_s2 = sadd.s32 14, %s1763_s27  ;;  %2416 = vst [vmem:[#allocation35_spill] sm:$0xff] %v1972_v4 }
  0xa5   : > { %738 = vrot.lane.b32.xlu1 %v1727_v2, %s2344_s28  ;;  %736 = vrot.lane.b32.xlu0 %v1730_v3, %s2344_s28  ;;  %s1804_s20 = sld [smem:[#allocation3 + %s304_s3]]  ;;  %s342_s19 = sadd.s32 23, %s1763_s27  ;;  %v1849_v20 = vstv %s1767_s11 }
  0xa7   : > { %v1852_v21 = vstv %s1770_s30  ;;  %s344_s30 = sadd.s32 24, %s1763_s27 }
  0xa8   : > { %v1896_v34 = vstv %s1789_s1 }
  0xa9   : > { %451 = vrot.lane.b32.xlu1 %v1721_v1, %s1462_s24  ;;  %449 = vrot.lane.b32.xlu0 %v1715_v0, %s1462_s24 }
  0xaa   : > { %v1915_v42 = vstv %s1800_s29 }
  0xab   : > { %v532_v31 = vstv %s1804_s20  ;;  %s1909_s20 = sld [smem:[#allocation3 + %s344_s30]] }
  0xac   : > { %v1920_v44 = vmul.f32 %v532_v31, %v530_v27  ;;  %v1924_v47 = vmul.f32 %v532_v31, %v531_v30  ;;  %v1953_v58 = vmul.f32 %v796_v39, %v532_v31  ;;  %v1955_v59 = vmul.f32 %v797_v40, %v532_v31 }
  0xad   : > { %758 = vrot.lane.b32.xlu1 %v1727_v2, %s1462_s24  ;;  %756 = vrot.lane.b32.xlu0 %v1730_v3, %s1462_s24  ;;  %s314_s24 = sadd.s32 9, %s1763_s27 }
  0xb1   : > { %486 = vrot.lane.b32.xlu1 %v1721_v1, %s1463_s6  ;;  %484 = vrot.lane.b32.xlu0 %v1715_v0, %s1463_s6 }
  0xb5   : > { %778 = vrot.lane.b32.xlu1 %v1727_v2, %s1463_s6  ;;  %776 = vrot.lane.b32.xlu0 %v1730_v3, %s1463_s6  ;;  %s1774_s6 = sld [smem:[#allocation3 + %s1763_s27]] }
  0xb9   : > { %549 = vrot.lane.b32.xlu1 %v1721_v1, %s1464_s10  ;;  %547 = vrot.lane.b32.xlu0 %v1715_v0, %s1464_s10 }
  0xbb   : > { %v1867_v25 = vstv %s1774_s6  ;;  %s310_s6 = sadd.s32 7, %s1763_s27 }
  0xbc   : > { %s1922_s1 = sld [smem:[#allocation3 + %s310_s6]] }
  0xbd   : > { %812 = vrot.lane.b32.xlu1 %v1727_v2, %s1464_s10  ;;  %810 = vrot.lane.b32.xlu0 %v1730_v3, %s1464_s10  ;;  %s332_s10 = sadd.s32 18, %s1763_s27 }
  0xbe   : > { %s1783_s28 = sld [smem:[#allocation3 + %s332_s10]]  ;;  %s340_s10 = sadd.s32 22, %s1763_s27 }
  0xbf   : > { %s1818_s12 = sld [smem:[#allocation3 + %s340_s10]] }
  0xc0   : > { %s1844_s10 = sld [smem:[#allocation3 + %s324_s2]] }
  0xc1   : > { %584 = vrot.lane.b32.xlu1 %v1721_v1, %s1465_s15  ;;  %582 = vrot.lane.b32.xlu0 %v1715_v0, %s1465_s15 }
  0xc4   : > { %v1890_v32 = vstv %s1783_s28 }
  0xc5   : > { %832 = vrot.lane.b32.xlu1 %v1727_v2, %s1465_s15  ;;  %830 = vrot.lane.b32.xlu0 %v1730_v3, %s1465_s15  ;;  %s1777_s15 = sld [smem:[#allocation3 + %s334_s16]]  ;;  %v542_v38 = vstv %s1818_s12 }
  0xc6   : > { %s1794_s16 = sld [smem:[#allocation3 + %s336_s7]]  ;;  %s306_s7 = sadd.s32 5, %s1763_s27  ;;  %v1937_v51 = vmul.f32 %v542_v38, %v530_v27  ;;  %v1946_v54 = vstv %s1844_s10  ;;  %v1948_v56 = vmul.f32 %v542_v38, %v531_v30  ;;  %v1962_v62 = vmul.f32 %v796_v39, %v542_v38 }
  0xc7   : > { %s1826_s9 = sld [smem:[#allocation3 + %s306_s7]]  ;;  %2409 = vst [vmem:[#allocation28_spill] sm:$0xff] %v1946_v54  ;;  %v1964_v63 = vmul.f32 %v797_v40, %v542_v38 }
  0xc8   : > { %s1861_s7 = sld [smem:[#allocation3 + %s342_s19]]  ;;  %2413 = vst [vmem:[#allocation32_spill] sm:$0xff] %v1962_v62 }
  0xc9   : > { %619 = vrot.lane.b32.xlu1 %v1721_v1, %s1466_s17  ;;  %617 = vrot.lane.b32.xlu0 %v1715_v0, %s1466_s17  ;;  %2414 = vst [vmem:[#allocation33_spill] sm:$0xff] %v1964_v63  ;;  %s959_s10 = sld [smem:[#allocation8 + %s1523_s22]] }
  0xcb   : > { %v1864_v24 = vstv %s1777_s15  ;;  %s328_s15 = sadd.s32 16, %s1763_s27 }
  0xcc   : > { %v1902_v37 = vstv %s1794_s16  ;;  %s1933_s29 = sld [smem:[#allocation3 + %s328_s15]]  ;;  %s348_s16 = sadd.s32 26, %s1763_s27 }
  0xcd   : > { %852 = vrot.lane.b32.xlu1 %v1727_v2, %s1466_s17  ;;  %850 = vrot.lane.b32.xlu0 %v1730_v3, %s1466_s17  ;;  %s300_s17 = sadd.s32 2, %s1763_s27  ;;  %v1943_v53 = vstv %s1826_s9  ;;  %s330_s9 = sadd.s32 17, %s1763_s27 }
  0xce   : > { %s1786_s14 = sld [smem:[#allocation3 + %s300_s17]]  ;;  %s338_s17 = sadd.s32 21, %s1763_s27  ;;  %2408 = vst [vmem:[#allocation27_spill] sm:$0xff] %v1943_v53  ;;  %v1951_v57 = vstv %s1861_s7 }
  0xcf   : > { %s1820_s3 = sld [smem:[#allocation3 + %s338_s17]]  ;;  %s326_s17 = sadd.s32 15, %s1763_s27  ;;  %2410 = vst [vmem:[#allocation29_spill] sm:$0xff] %v1951_v57 }
  0xd0   : > { %s1886_s19 = sld [smem:[#allocation3 + %s326_s17]]  ;;  %s1155_s7 = sshll.u32 %s1523_s22, 8 }
  0xd1   : > { %654 = vrot.lane.b32.xlu1 %v1721_v1, %s1467_s13  ;;  %652 = vrot.lane.b32.xlu0 %v1715_v0, %s1467_s13  ;;  %v364_v0 = vld [vmem:[#allocation11 + $0x7] ss:$8 sm:$0x3]  ;;  %s964_s17 = sld [smem:[#allocation9 + %s1523_s22]]  ;;  %s992_s22 = scalar_lea.sflag [#allocation5], %s1702_s26 }
  0xd2   : > { %v1996_v38 = vrot.slane %v364_v0, %v1807_v8 }
  0xd4   : > { %v1893_v33 = vstv %s1786_s14  ;;  %s312_s14 = sadd.s32 8, %s1763_s27  ;;  %2420 = vst [vmem:[#allocation39_spill] sm:$0xff] %v1996_v38 }
  0xd5   : > { %872 = vrot.lane.b32.xlu1 %v1727_v2, %s1467_s13  ;;  %870 = vrot.lane.b32.xlu0 %v1730_v3, %s1467_s13  ;;  %s1780_s13 = sld [smem:[#allocation3 + %s314_s24]]  ;;  %v1918_v43 = vstv %s1820_s3  ;;  %v1969_v3 = vrot.slane %v362_v55, %v1807_v8 }
  0xd6   : > { %s1797_s24 = sld [smem:[#allocation3 + %s302_s0]]  ;;  %v1978_v7 = vstv %s1886_s19 }
  0xd7   : > { %s1813_s0 = sld [smem:[#allocation3 + %s322_s4]]  ;;  %s308_s4 = sadd.s32 6, %s1763_s27  ;;  %2415 = vst [vmem:[#allocation34_spill] sm:$0xff] %v1969_v3  ;;  %2418 = vst [vmem:[#allocation37_spill] sm:$0xff] %v1978_v7 }
  0xd8   : > { %s1874_s11 = sld [smem:[#allocation3 + %s308_s4]] }
  0xdb   : > { %v1878_v28 = vstv %s1780_s13  ;;  %s346_s13 = sadd.s32 25, %s1763_s27  ;;  %s1988_s27 = sld [smem:[#allocation3 + %s312_s14]] }
  0xdc   : > { %v1912_v41 = vstv %s1797_s24  ;;  %s1935_s28 = sld [smem:[#allocation3 + %s346_s13]]  ;;  %s2289_s13 = scalar_lea.hbm %s2340_s5, %s1155_s7 }
  0xdd   : > { %v537_v36 = vstv %s1813_s0  ;;  %s1998_s24 = sld [smem:[#allocation3 + %s330_s9]] }
  0xde   : > { %v1926_v48 = vmul.f32 %v537_v36, %v530_v27  ;;  %v1928_v49 = vmul.f32 %v537_v36, %v531_v30  ;;  %v1958_v60 = vmul.f32 %v796_v39, %v537_v36  ;;  %v1960_v61 = vmul.f32 %v797_v40, %v537_v36  ;;  %v366_v30 = vld [vmem:[#allocation11 + $0x10] ss:$8 sm:$0x3]  ;;  %s2000_s0 = sld [smem:[#allocation3 + %s348_s16]] }
  0xdf   : > { %v1975_v6 = vstv %s1874_s11  ;;  %v1993_v36 = vstv %s1909_s20  ;;  %s2458_s11 = sshll.u32 %s1702_s26, 5  ;;  %s1469_s20 = smov [#allocation14]  }
  0xe0   : > { %2411 = vst [vmem:[#allocation30_spill] sm:$0xff] %v1958_v60  ;;  %2412 = vst [vmem:[#allocation31_spill] sm:$0xff] %v1960_v61  ;;  %s295_s30 = scalar_lea.vmem [#allocation14], %s2458_s11 }
  0xe1   : > { %2417 = vst [vmem:[#allocation36_spill] sm:$0xff] %v1975_v6  ;;  %2419 = vst [vmem:[#allocation38_spill] sm:$0xff] %v1993_v36  ;;  %v2048_v63 = vstv %s1988_s27  ;;  %s1005_s19 = sshll.u32 %s295_s30, 4  ;;  %s2291_s19 = int_to_ptr.vmem [resolvable:$true] %s1005_s19 }
  0xe2   : > { %2427 = vst [vmem:[#allocation46_spill] sm:$0xff] %v2048_v63 }
 0x10b   : > { %v415_v45 = vpop.permute.xlu1 %414  ;;  %v378_v46 = vpop.permute.xlu0 %377 }
 0x10f   : > { %v417_v1 = vpop.permute.xlu1 %416  ;;  %v380_v2 = vpop.permute.xlu0 %379 }
 0x110   : > { %v419_v11 = vsel %vm418_vm0, %v415_v45, %v417_v1  ;;  %v420_v12 = vsel %vm418_vm0, %v417_v1, %v415_v45  ;;  %v384_v14 = vsel %vm383_vm1, %v378_v46, %v380_v2  ;;  %v385_v27 = vsel %vm383_vm1, %v380_v2, %v378_v46 }
 0x111   : > { %v432_v31 = vmul.f32 %v1833_v16, %v420_v12  ;;  %v433_v35 = vmul.f32 %v1836_v17, %v419_v11  ;;  %v397_v39 = vmul.f32 %v1839_v18, %v385_v27  ;;  %v398_v40 = vmul.f32 %v1842_v19, %v384_v14 }
 0x112   : > { %v2006_v45 = vrot.slane %v364_v0, %v1810_v9  ;;  %v2009_v46 = vstv %s1922_s1  ;;  %v2012_v2 = vstv %s1933_s29  ;;  %v2015_v11 = vstv %s1935_s28  ;;  %s1372_s1 = sshll.u32 %s1469_s20, 4  ;;  %s1373_s1 = int_to_ptr.vmem [resolvable:$false] %s1372_s1 }
 0x113   : > { %2422 = vst [vmem:[#allocation41_spill] sm:$0xff] %v2009_v46  ;;  %v719_v55 = vpop.permute.xlu1 %718  ;;  %v717_v1 = vpop.permute.xlu0 %716  ;;  %2423 = vst [vmem:[#allocation42_spill] sm:$0xff] %v2012_v2  ;;  %v2018_v12 = vrot.slane %v366_v30, %v1807_v8  ;;  %v435_v14 = vmul.f32 %v1849_v20, %v432_v31  ;;  %v436_v27 = vmul.f32 %v1849_v20, %v433_v35  ;;  %s1374_s29 = scalar_lea.vmem %s1373_s1, 1024  ;;  %p1375_p3 = scmp.lt.s32.totalorder %s2291_s19, %s1373_s1 }
 0x114   : > { %2421 = vst [vmem:[#allocation40_spill] sm:$0xff] %v2006_v45  ;;  %2424 = vst [vmem:[#allocation43_spill] sm:$0xff] %v2015_v11  ;;  %v440_v0 = vmul.f32 %v1852_v21, %v432_v31  ;;  %v441_v15 = vmul.f32 %v1852_v21, %v433_v35  ;;  %v445_v13 = vmul.f32 %v1864_v24, %v432_v31 }
 0x115   : > { %2425 = vst [vmem:[#allocation44_spill] sm:$0xff] %v2018_v12  ;;  %v446_v2 = vmul.f32 %v1864_v24, %v433_v35  ;;  %v400_v8 = vmul.f32 %v1867_v25, %v397_v39  ;;  %v401_v12 = vmul.f32 %v1867_v25, %v398_v40  ;;  %v720_v11 = vsel %vm383_vm1, %v717_v1, %v719_v55 }
 0x116   : > { %v721_v46 = vsel %vm383_vm1, %v719_v55, %v717_v1  ;;  %v405_v45 = vmul.f32 %v1878_v28, %v397_v39  ;;  %v406_v38 = vmul.f32 %v1878_v28, %v398_v40  ;;  %v410_v31 = vmul.f32 %v1890_v32, %v397_v39 }
 0x117   : > { %v411_v35 = vmul.f32 %v1890_v32, %v398_v40  ;;  %v739_v36 = vpop.permute.xlu1 %738  ;;  %v737_v7 = vpop.permute.xlu0 %736  ;;  %v722_v6 = vmul.f32 %v721_v46, %v1839_v18  ;;  %v723_v4 = vmul.f32 %v720_v11, %v1842_v19  ;;  %v2045_v1 = vrot.slane %v366_v30, %v1810_v9 }
 0x118   : > { %v740_v3 = vsel %vm418_vm0, %v737_v7, %v739_v36  ;;  %v741_v55 = vsel %vm418_vm0, %v739_v36, %v737_v7  ;;  %v2051_v39 = vstv %s1998_s24  ;;  %v2054_v40 = vstv %s2000_s0 }
 0x119   : > { %2426 = vst [vmem:[#allocation45_spill] sm:$0xff] %v2045_v1  ;;  %2428 = vst [vmem:[#allocation47_spill] sm:$0xff] %v2051_v39  ;;  %v742_v62 = vmul.f32 %v741_v55, %v1833_v16  ;;  %v743_v18 = vmul.f32 %v740_v3, %v1836_v17  ;;  %v1468_v19 = vmov 0.0   ;;  %v437_v9 = vadd.f32 %v435_v14, %v400_v8 }
 0x11a   : > { %2429 = vst [vmem:[#allocation48_spill] sm:$0xff] %v2054_v40  ;;  %v2060_v46 = vsel %vm369_vm3, 1.0, %v1468_v19  ;;  %v2064_v7 = vsel %vm372_vm4, 1.0, %v1468_v19  ;;  %v438_v30 = vadd.f32 %v436_v27, %v401_v12  ;;  %v442_v36 = vadd.f32 %v440_v0, %v405_v45 }
 0x11b   : > { %2430 = vst [vmem:[#allocation49_spill] sm:$0xff] %v2060_v46  ;;  %2431 = vst [vmem:[#allocation50_spill] sm:$0xff] %v2064_v7  ;;  %v443_v11 = vadd.f32 %v441_v15, %v406_v38  ;;  %v452_v39 = vpop.permute.xlu1 %451  ;;  %v450_v63 = vpop.permute.xlu0 %449  ;;  %v447_v16 = vadd.f32 %v445_v13, %v410_v31  ;;  %v448_v55 = vadd.f32 %v446_v2, %v411_v35 }
 0x11c   : > { %v724_v17 = vmul.f32 %v722_v6, %v1867_v25  ;;  %v725_v3 = vmul.f32 %v723_v4, %v1867_v25  ;;  %v728_v46 = vmul.f32 %v722_v6, %v1878_v28  ;;  %v729_v5 = vmul.f32 %v723_v4, %v1878_v28 }
 0x11d   : > { %v454_v14 = vsel %vm453_vm2, %v450_v63, %v452_v39  ;;  %v455_v15 = vsel %vm453_vm2, %v452_v39, %v450_v63  ;;  %v732_v38 = vmul.f32 %v722_v6, %v1890_v32  ;;  %v733_v45 = vmul.f32 %v723_v4, %v1890_v32 }
 0x11e   : > { %v744_v13 = vmul.f32 %v742_v62, %v1849_v20  ;;  %v745_v2 = vmul.f32 %v743_v18, %v1849_v20  ;;  %v748_v25 = vmul.f32 %v742_v62, %v1852_v21  ;;  %v749_v12 = vmul.f32 %v743_v18, %v1852_v21 }
 0x11f   : > { %v467_v28 = vmul.f32 %v1856_v22, %v455_v15  ;;  %v468_v27 = vmul.f32 %v1859_v23, %v454_v14  ;;  %v759_v0 = vpop.permute.xlu1 %758  ;;  %v757_v8 = vpop.permute.xlu0 %756  ;;  %v752_v63 = vmul.f32 %v742_v62, %v1864_v24  ;;  %v753_v6 = vmul.f32 %v743_v18, %v1864_v24 }
 0x120   : > { %v760_v32 = vsel %vm453_vm2, %v757_v8, %v759_v0  ;;  %v761_v20 = vsel %vm453_vm2, %v759_v0, %v757_v8  ;;  %v746_v19 = vadd.f32 %v744_v13, %v724_v17  ;;  %v747_v14 = vadd.f32 %v745_v2, %v725_v3 }
 0x121   : > { %v470_v4 = vmul.f32 %v1893_v33, %v467_v28  ;;  %v471_v21 = vmul.f32 %v1893_v33, %v468_v27  ;;  %v475_v31 = vmul.f32 %v1896_v34, %v467_v28  ;;  %v476_v35 = vmul.f32 %v1896_v34, %v468_v27 }
 0x122   : > { %v480_v39 = vmul.f32 %v1902_v37, %v467_v28  ;;  %v481_v62 = vmul.f32 %v1902_v37, %v468_v27  ;;  %v762_v24 = vmul.f32 %v761_v20, %v1856_v22  ;;  %v763_v18 = vmul.f32 %v760_v32, %v1859_v23 }
 0x123   : > { %v750_v15 = vadd.f32 %v748_v25, %v728_v46  ;;  %v751_v0 = vadd.f32 %v749_v12, %v729_v5  ;;  %v487_v8 = vpop.permute.xlu1 %486  ;;  %v485_v7 = vpop.permute.xlu0 %484  ;;  %v754_v40 = vadd.f32 %v752_v63, %v732_v38  ;;  %v755_v1 = vadd.f32 %v753_v6, %v733_v45 }
 0x124   : > { %v472_v57 = vadd.f32 %v470_v4, %v437_v9  ;;  %v473_v61 = vadd.f32 %v471_v21, %v438_v30  ;;  %v477_v60 = vadd.f32 %v475_v31, %v442_v36  ;;  %v478_v54 = vadd.f32 %v476_v35, %v443_v11 }
 0x125   : > { %v764_v28 = vmul.f32 %v762_v24, %v1893_v33  ;;  %v765_v27 = vmul.f32 %v763_v18, %v1893_v33  ;;  %v482_v53 = vadd.f32 %v480_v39, %v447_v16  ;;  %v483_v22 = vadd.f32 %v481_v62, %v448_v55 }
 0x126   : > { %v489_v23 = vsel %vm488_vm5, %v485_v7, %v487_v8  ;;  %v490_v46 = vsel %vm488_vm5, %v487_v8, %v485_v7  ;;  %v768_v17 = vmul.f32 %v762_v24, %v1896_v34  ;;  %v769_v9 = vmul.f32 %v763_v18, %v1896_v34 }
 0x127   : > { %v772_v30 = vmul.f32 %v762_v24, %v1902_v37  ;;  %v773_v36 = vmul.f32 %v763_v18, %v1902_v37  ;;  %v779_v11 = vpop.permute.xlu1 %778  ;;  %v777_v33 = vpop.permute.xlu0 %776  ;;  %v502_v16 = vmul.f32 %v1870_v26, %v490_v46  ;;  %v503_v55 = vmul.f32 %v1881_v29, %v489_v23 }
 0x128   : > { %v780_v3 = vsel %vm488_vm5, %v777_v33, %v779_v11  ;;  %v781_v7 = vsel %vm488_vm5, %v779_v11, %v777_v33  ;;  %v766_v5 = vadd.f32 %v764_v28, %v746_v19  ;;  %v767_v38 = vadd.f32 %v765_v27, %v747_v14 }
 0x129   : > { %v782_v34 = vmul.f32 %v781_v7, %v1870_v26  ;;  %v783_v45 = vmul.f32 %v780_v3, %v1881_v29  ;;  %v505_v37 = vmul.f32 %v1912_v41, %v502_v16  ;;  %v506_v13 = vmul.f32 %v1912_v41, %v503_v55  ;;  %v2434_v7 = vld [vmem:[#allocation30_spill] sm:$0xff] }
 0x12a   : > { %v510_v2 = vmul.f32 %v1915_v42, %v502_v16  ;;  %v511_v25 = vmul.f32 %v1915_v42, %v503_v55  ;;  %v515_v12 = vmul.f32 %v1918_v43, %v502_v16  ;;  %v516_v63 = vmul.f32 %v1918_v43, %v503_v55  ;;  %v2433_v16 = vld [vmem:[#allocation28_spill] sm:$0xff] }
 0x12b   : > { %v784_v6 = vmul.f32 %v782_v34, %v1912_v41  ;;  %v785_v32 = vmul.f32 %v783_v45, %v1912_v41  ;;  %v550_v20 = vpop.permute.xlu1 %549  ;;  %v548_v26 = vpop.permute.xlu0 %547  ;;  %v507_v4 = vadd.f32 %v505_v37, %v472_v57  ;;  %v508_v29 = vadd.f32 %v506_v13, %v473_v61  ;;  %v2437_v37 = vld [vmem:[#allocation32_spill] sm:$0xff] }
 0x12c   : > { %v512_v21 = vadd.f32 %v510_v2, %v477_v60  ;;  %v513_v31 = vadd.f32 %v511_v25, %v478_v54  ;;  %v770_v35 = vadd.f32 %v768_v17, %v750_v15  ;;  %v771_v39 = vadd.f32 %v769_v9, %v751_v0  ;;  %v2438_v2 = vld [vmem:[#allocation33_spill] sm:$0xff] }
 0x12d   : > { %v774_v62 = vadd.f32 %v772_v30, %v754_v40  ;;  %v775_v24 = vadd.f32 %v773_v36, %v755_v1  ;;  %v788_v18 = vmul.f32 %v782_v34, %v1915_v42  ;;  %v789_v19 = vmul.f32 %v783_v45, %v1915_v42  ;;  %v2432_v36 = vld [vmem:[#allocation27_spill] sm:$0xff] }
 0x12e   : > { %v792_v14 = vmul.f32 %v782_v34, %v1918_v43  ;;  %v793_v41 = vmul.f32 %v783_v45, %v1918_v43  ;;  %v517_v8 = vadd.f32 %v515_v12, %v482_v53  ;;  %v518_v28 = vadd.f32 %v516_v63, %v483_v22 }
 0x12f   : > { %v786_v57 = vadd.f32 %v784_v6, %v766_v5  ;;  %v787_v61 = vadd.f32 %v785_v32, %v767_v38  ;;  %v813_v60 = vpop.permute.xlu1 %812  ;;  %v811_v54 = vpop.permute.xlu0 %810  ;;  %v535_v15 = vadd.f32 %v1920_v44, %v507_v4  ;;  %v536_v1 = vadd.f32 %v1924_v47, %v508_v29  ;;  %v2435_v38 = vld [vmem:[#allocation31_spill] sm:$0xff] }
 0x130   : > { %v540_v40 = vadd.f32 %v1926_v48, %v512_v21  ;;  %v541_v0 = vadd.f32 %v1928_v49, %v513_v31  ;;  %v790_v27 = vadd.f32 %v788_v18, %v770_v35  ;;  %v791_v42 = vadd.f32 %v789_v19, %v771_v39  ;;  %v2439_v18 = vld [vmem:[#allocation34_spill] sm:$0xff] }
 0x131   : > { %v552_v23 = vsel %vm551_vm6, %v548_v26, %v550_v20  ;;  %v553_v43 = vsel %vm551_vm6, %v550_v20, %v548_v26  ;;  %v794_v53 = vadd.f32 %v792_v14, %v774_v62  ;;  %v795_v22 = vadd.f32 %v793_v41, %v775_v24  ;;  %v2440_v14 = vld [vmem:[#allocation35_spill] sm:$0xff] }
 0x132   : > { %v565_v46 = vmul.f32 %v1931_v50, %v552_v23  ;;  %v566_v44 = vmul.f32 %v1940_v52, %v553_v43  ;;  %v545_v47 = vadd.f32 %v1937_v51, %v517_v8  ;;  %v546_v48 = vadd.f32 %v1948_v56, %v518_v28  ;;  %v2442_v43 = vld [vmem:[#allocation37_spill] sm:$0xff] }
 0x133   : > { %v800_v49 = vadd.f32 %v1953_v58, %v786_v57  ;;  %v801_v17 = vadd.f32 %v1955_v59, %v787_v61  ;;  %v585_v9 = vpop.permute.xlu1 %584  ;;  %v583_v30 = vpop.permute.xlu0 %582  ;;  %v804_v5 = vadd.f32 %v2434_v7, %v790_v27  ;;  %v805_v51 = vadd.f32 %v2435_v38, %v791_v42  ;;  %v2436_v59 = vld [vmem:[#allocation29_spill] sm:$0xff] }
 0x134   : > { %v568_v11 = vmul.f32 %v2432_v36, %v565_v46  ;;  %v569_v33 = vmul.f32 %v2432_v36, %v566_v44  ;;  %v573_v55 = vmul.f32 %v2433_v16, %v565_v46  ;;  %v574_v3 = vmul.f32 %v2433_v16, %v566_v44 }
 0x135   : > { %v814_v56 = vsel %vm551_vm6, %v811_v54, %v813_v60  ;;  %v815_v58 = vsel %vm551_vm6, %v813_v60, %v811_v54  ;;  %v578_v34 = vmul.f32 %v2436_v59, %v565_v46  ;;  %v579_v45 = vmul.f32 %v2436_v59, %v566_v44  ;;  %v2443_v46 = vld [vmem:[#allocation38_spill] sm:$0xff] }
 0x136   : > { %v808_v13 = vadd.f32 %v2437_v37, %v794_v53  ;;  %v809_v25 = vadd.f32 %v2438_v2, %v795_v22  ;;  %v570_v12 = vadd.f32 %v568_v11, %v535_v15  ;;  %v571_v63 = vadd.f32 %v569_v33, %v536_v1  ;;  %v2444_v2 = vld [vmem:[#allocation39_spill] sm:$0xff] }
 0x137   : > { %v816_v6 = vmul.f32 %v814_v56, %v1931_v50  ;;  %v817_v32 = vmul.f32 %v815_v58, %v1940_v52  ;;  %v833_v20 = vpop.permute.xlu1 %832  ;;  %v831_v26 = vpop.permute.xlu0 %830  ;;  %v575_v4 = vadd.f32 %v573_v55, %v540_v40  ;;  %v576_v29 = vadd.f32 %v574_v3, %v541_v0  ;;  %v2441_v40 = vld [vmem:[#allocation36_spill] sm:$0xff] }
 0x138   : > { %v587_v21 = vsel %vm586_vm7, %v583_v30, %v585_v9  ;;  %v588_v31 = vsel %vm586_vm7, %v585_v9, %v583_v30  ;;  %v580_v24 = vadd.f32 %v578_v34, %v545_v47  ;;  %v581_v52 = vadd.f32 %v579_v45, %v546_v48 }
 0x139   : > { %v818_v35 = vmul.f32 %v816_v6, %v2432_v36  ;;  %v819_v39 = vmul.f32 %v817_v32, %v2432_v36  ;;  %v822_v62 = vmul.f32 %v816_v6, %v2433_v16  ;;  %v823_v50 = vmul.f32 %v817_v32, %v2433_v16 }
 0x13a   : > { %v600_v19 = vmul.f32 %v2439_v18, %v587_v21  ;;  %v601_v41 = vmul.f32 %v2440_v14, %v588_v31  ;;  %v826_v8 = vmul.f32 %v816_v6, %v2436_v59  ;;  %v827_v28 = vmul.f32 %v817_v32, %v2436_v59  ;;  %v2446_v21 = vld [vmem:[#allocation41_spill] sm:$0xff] }
 0x13b   : > { %v834_v57 = vsel %vm586_vm7, %v831_v26, %v833_v20  ;;  %v835_v61 = vsel %vm586_vm7, %v833_v20, %v831_v26  ;;  %v620_v60 = vpop.permute.xlu1 %619  ;;  %v618_v54 = vpop.permute.xlu0 %617  ;;  %v820_v15 = vadd.f32 %v818_v35, %v800_v49  ;;  %v821_v1 = vadd.f32 %v819_v39, %v801_v17  ;;  %v2447_v39 = vld [vmem:[#allocation42_spill] sm:$0xff] }
 0x13c   : > { %v603_v0 = vmul.f32 %v2441_v40, %v600_v19  ;;  %v604_v27 = vmul.f32 %v2441_v40, %v601_v41  ;;  %v824_v42 = vadd.f32 %v822_v62, %v804_v5  ;;  %v825_v23 = vadd.f32 %v823_v50, %v805_v51 }
 0x13d   : > { %v608_v53 = vmul.f32 %v2442_v43, %v600_v19  ;;  %v609_v22 = vmul.f32 %v2442_v43, %v601_v41  ;;  %v613_v44 = vmul.f32 %v2443_v46, %v600_v19  ;;  %v614_v47 = vmul.f32 %v2443_v46, %v601_v41 }
 0x13e   : > { %v836_v48 = vmul.f32 %v834_v57, %v2439_v18  ;;  %v837_v49 = vmul.f32 %v835_v61, %v2440_v14  ;;  %v828_v17 = vadd.f32 %v826_v8, %v808_v13  ;;  %v829_v9 = vadd.f32 %v827_v28, %v809_v25 }
 0x13f   : > { %v605_v30 = vadd.f32 %v603_v0, %v570_v12  ;;  %v606_v36 = vadd.f32 %v604_v27, %v571_v63  ;;  %v853_v11 = vpop.permute.xlu1 %852  ;;  %v851_v33 = vpop.permute.xlu0 %850  ;;  %v610_v5 = vadd.f32 %v608_v53, %v575_v4  ;;  %v611_v38 = vadd.f32 %v609_v22, %v576_v29  ;;  %v2445_v12 = vld [vmem:[#allocation40_spill] sm:$0xff]  ;;  %v2450_v22 = vld [vmem:[#allocation45_spill] sm:$0xff] }
 0x140   : > { %v838_v16 = vmul.f32 %v836_v48, %v2441_v40  ;;  %v839_v55 = vmul.f32 %v837_v49, %v2441_v40  ;;  %v842_v3 = vmul.f32 %v836_v48, %v2442_v43  ;;  %v843_v7 = vmul.f32 %v837_v49, %v2442_v43  ;;  %v2449_v43 = vld [vmem:[#allocation44_spill] sm:$0xff] }
 0x141   : > { %v622_v51 = vsel %vm621_vm8, %v618_v54, %v620_v60  ;;  %v623_v56 = vsel %vm621_vm8, %v620_v60, %v618_v54  ;;  %v615_v58 = vadd.f32 %v613_v44, %v580_v24  ;;  %v616_v59 = vadd.f32 %v614_v47, %v581_v52  ;;  %v2448_v24 = vld [vmem:[#allocation43_spill] sm:$0xff] }
 0x142   : > { %v846_v34 = vmul.f32 %v836_v48, %v2443_v46  ;;  %v847_v45 = vmul.f32 %v837_v49, %v2443_v46  ;;  %v840_v37 = vadd.f32 %v838_v16, %v820_v15  ;;  %v841_v13 = vadd.f32 %v839_v55, %v821_v1 }
 0x143   : > { %v635_v25 = vmul.f32 %v2444_v2, %v622_v51  ;;  %v636_v63 = vmul.f32 %v2445_v12, %v623_v56  ;;  %v2197_v6 = vadd.f32 %v842_v3, %v824_v42  ;;  %v2199_v32 = vadd.f32 %v843_v7, %v825_v23  ;;  %v655_v4 = vpop.permute.xlu1 %654  ;;  %v653_v29 = vpop.permute.xlu0 %652  ;;  %v2453_v3 = vld [vmem:[#allocation48_spill] sm:$0xff] }
 0x144   : > { %v854_v20 = vsel %vm621_vm8, %v851_v33, %v853_v11  ;;  %v855_v26 = vsel %vm621_vm8, %v853_v11, %v851_v33  ;;  %v848_v41 = vadd.f32 %v846_v34, %v828_v17  ;;  %v849_v8 = vadd.f32 %v847_v45, %v829_v9  ;;  %v2452_v33 = vld [vmem:[#allocation47_spill] sm:$0xff] }
 0x145   : > { %v638_v31 = vmul.f32 %v2446_v21, %v635_v25  ;;  %v639_v35 = vmul.f32 %v2446_v21, %v636_v63  ;;  %v643_v62 = vmul.f32 %v2447_v39, %v635_v25  ;;  %v644_v50 = vmul.f32 %v2447_v39, %v636_v63 }
 0x146   : > { %v648_v52 = vmul.f32 %v2448_v24, %v635_v25  ;;  %v649_v18 = vmul.f32 %v2448_v24, %v636_v63  ;;  %v856_v19 = vmul.f32 %v854_v20, %v2444_v2  ;;  %v857_v14 = vmul.f32 %v855_v26, %v2445_v12 }
 0x147   : > { %v657_v28 = vsel %vm656_vm9, %v653_v29, %v655_v4  ;;  %v658_v57 = vsel %vm656_vm9, %v655_v4, %v653_v29  ;;  %v640_v61 = vadd.f32 %v638_v31, %v605_v30  ;;  %v641_v60 = vadd.f32 %v639_v35, %v606_v36  ;;  %v873_v44 = vpop.permute.xlu1 %872  ;;  %v871_v47 = vpop.permute.xlu0 %870  ;;  %v2451_v30 = vld [vmem:[#allocation46_spill] sm:$0xff] }
 0x148   : > { %v858_v54 = vmul.f32 %v856_v19, %v2446_v21  ;;  %v859_v15 = vmul.f32 %v857_v14, %v2446_v21  ;;  %v645_v1 = vadd.f32 %v643_v62, %v610_v5  ;;  %v646_v40 = vadd.f32 %v644_v50, %v611_v38 }
 0x149   : > { %v650_v0 = vadd.f32 %v648_v52, %v615_v58  ;;  %v651_v27 = vadd.f32 %v649_v18, %v616_v59  ;;  %v866_v42 = vmul.f32 %v856_v19, %v2448_v24  ;;  %v867_v23 = vmul.f32 %v857_v14, %v2448_v24  ;;  %v2454_v24 = vld [vmem:[#allocation49_spill] sm:$0xff] }
 0x14a   : > { %v670_v53 = vmul.f32 %v2449_v43, %v657_v28  ;;  %v671_v46 = vmul.f32 %v2450_v22, %v658_v57  ;;  %v860_v48 = vadd.f32 %v858_v54, %v840_v37  ;;  %v861_v49 = vadd.f32 %v859_v15, %v841_v13 }
 0x14b   : > { %v862_v17 = vmul.f32 %v856_v19, %v2447_v39  ;;  %v863_v9 = vmul.f32 %v857_v14, %v2447_v39  ;;  %v874_v38 = vsel %vm656_vm9, %v871_v47, %v873_v44  ;;  %v875_v51 = vsel %vm656_vm9, %v873_v44, %v871_v47 }
 0x14c   : > { %v673_v36 = vmul.f32 %v2451_v30, %v670_v53  ;;  %v674_v11 = vmul.f32 %v2451_v30, %v671_v46  ;;  %v678_v16 = vmul.f32 %v2452_v33, %v670_v53  ;;  %v679_v55 = vmul.f32 %v2452_v33, %v671_v46 }
 0x14d   : > { %v683_v7 = vmul.f32 %v2453_v3, %v670_v53  ;;  %v684_v5 = vmul.f32 %v2453_v3, %v671_v46  ;;  %v868_v56 = vadd.f32 %v866_v42, %v848_v41  ;;  %v869_v58 = vadd.f32 %v867_v23, %v849_v8 }
 0x14e   : > { %v675_v59 = vadd.f32 %v673_v36, %v640_v61  ;;  %v676_v34 = vadd.f32 %v674_v11, %v641_v60  ;;  %v876_v13 = vmul.f32 %v874_v38, %v2449_v43  ;;  %v877_v2 = vmul.f32 %v875_v51, %v2450_v22 }
 0x14f   : > { %v685_v45 = vadd.f32 %v683_v7, %v650_v0  ;;  %v686_v37 = vadd.f32 %v684_v5, %v651_v27  ;;  %v680_v25 = vadd.f32 %v678_v16, %v645_v1  ;;  %v681_v12 = vadd.f32 %v679_v55, %v646_v40  ;;  %v2455_v1 = vld [vmem:[#allocation50_spill] sm:$0xff] }
 0x150   : > { %v687_v63 = vrot.slane %v675_v59, 7  ;;  %v688_v20 = vrot.slane %v676_v34, 7  ;;  %v878_v29 = vmul.f32 %v876_v13, %v2451_v30  ;;  %v879_v10 = vmul.f32 %v877_v2, %v2451_v30 }
 0x151   : > { %v693_v26 = vrot.slane %v685_v45, 1  ;;  %v694_v4 = vrot.slane %v686_v37, 1  ;;  %v882_v21 = vmul.f32 %v876_v13, %v2452_v33  ;;  %v883_v31 = vmul.f32 %v877_v2, %v2452_v33 }
 0x152   : > { %v886_v35 = vmul.f32 %v876_v13, %v2453_v3  ;;  %v887_v39 = vmul.f32 %v877_v2, %v2453_v3  ;;  %v880_v62 = vadd.f32 %v878_v29, %v860_v48  ;;  %v881_v50 = vadd.f32 %v879_v10, %v861_v49 }
 0x153   : > { %v689_v52 = vmul.f32 %v2454_v24, %v687_v63  ;;  %v690_v18 = vmul.f32 %v2454_v24, %v688_v20  ;;  %v864_v19 = vadd.f32 %v862_v17, %v2197_v6  ;;  %v865_v14 = vadd.f32 %v863_v9, %v2199_v32  ;;  %v2456_v63 = vld [vmem:[#allocation25_spill] sm:$0xff] }
 0x154   : > { %v888_v41 = vadd.f32 %v886_v35, %v868_v56  ;;  %v889_v8 = vadd.f32 %v887_v39, %v869_v58  ;;  %v890_v28 = vrot.slane %v880_v62, 7  ;;  %v891_v57 = vrot.slane %v881_v50, 7 }
 0x155   : > { %v691_v61 = vadd.f32 %v689_v52, %v680_v25  ;;  %v692_v60 = vadd.f32 %v690_v18, %v681_v12  ;;  %v695_v40 = vmul.f32 %v2455_v1, %v693_v26  ;;  %v696_v0 = vmul.f32 %v2455_v1, %v694_v4  ;;  %v2457_v26 = vld [vmem:[#allocation26_spill] sm:$0xff] }
 0x156   : > { %v896_v54 = vrot.slane %v888_v41, 1  ;;  %v897_v15 = vrot.slane %v889_v8, 1  ;;  %v884_v27 = vadd.f32 %v882_v21, %v864_v19  ;;  %v885_v42 = vadd.f32 %v883_v31, %v865_v14 }
 0x157   : > { %v892_v23 = vmul.f32 %v2454_v24, %v890_v28  ;;  %v893_v6 = vmul.f32 %v2454_v24, %v891_v57  ;;  %v2251_v43 = vadd.f32 %v695_v40, %v691_v61  ;;  %v2253_v32 = vadd.f32 %v696_v0, %v692_v60 }
 0x158   : > { %v898_v46 = vmul.f32 %v2455_v1, %v896_v54  ;;  %v899_v44 = vmul.f32 %v2455_v1, %v897_v15 }
 0x159   : > { %v894_v53 = vadd.f32 %v892_v23, %v884_v27  ;;  %v895_v22 = vadd.f32 %v893_v6, %v885_v42  ;;  %v701_v47 = vadd.f32 %v2253_v32, %v2251_v43  ;;  %v962_v6 = vstv %s959_s10 }
 0x15b   : > { %v2259_v48 = vadd.f32 %v898_v46, %v894_v53  ;;  %v2261_v49 = vadd.f32 %v899_v44, %v895_v22  ;;  %702 = vadd.xlane.f32.xlu0 %v701_v47  ;;  %v966_v46 = vstv %s964_s17 }
 0x15d   : > { %v905_v17 = vadd.f32 %v2261_v49, %v2259_v48 }
 0x15f   : > { %906 = vadd.xlane.f32.xlu1 %v905_v17 }
 0x1e8   : > { %v703_v9 = vpop.xlane.xlu0 %702 }
 0x1e9   : > { %v704_v30 = vrot.slane %v703_v9, 4 }
 0x1eb   : > { %v705_v36 = vadd.f32 %v704_v30, %v703_v9 }
 0x1ec   : > { %v907_v11 = vpop.xlane.xlu1 %906 }
 0x1ed   : > { %v908_v33 = vrot.slane %v907_v11, 4  ;;  %v706_v16 = vrot.slane %v705_v36, 2 }
 0x1ef   : > { %v909_v55 = vadd.f32 %v908_v33, %v907_v11  ;;  %v707_v3 = vadd.f32 %v706_v16, %v705_v36  ;;  %v972_v11 = vld [vmem:[%s1708_s23] sm:$0xff]  ;;  %v973_v33 = vld [vmem:[%s1708_s23 + $0x8] sm:$0xff]  ;;  %v1145_v16 = vld [vmem:[%s1708_s23 + $0x10] sm:$0xff] }
 0x1f1   : > { %v910_v7 = vrot.slane %v909_v55, 2  ;;  %v708_v5 = vrot.slane %v707_v3, 1 }
 0x1f3   : > { %v911_v38 = vadd.f32 %v910_v7, %v909_v55  ;;  %v709_v51 = vadd.f32 %v708_v5, %v707_v3  ;;  %v1146_v55 = vld [vmem:[%s1708_s23 + $0x18] sm:$0xff]  ;;  %s1368_s23 = scalar_lea.vmem %s2291_s19, 512 }
 0x1f4   : > { %p1369_p9 = scmp.ne.s32.totalorder %s2291_s19, %s1368_s23  ;;  %p1376_p7 = scmp.lt.s32.totalorder %s1374_s29, %s1368_s23 }
 0x1f5   : > { %v912_v56 = vrot.slane %v911_v38, 1  ;;  %1156 = vpush %v709_v51 }
 0x1f6   : > { %p1370_p1 = pnand %p1369_p9, %p1635_p11  ;;  %p1377_p12 = por %p1376_p7, %p1375_p3 }
 0x1f7   : > { %v913_v58 = vadd.f32 %v912_v56, %v911_v38 }
 0x1f8   : > { %p1371_p8 = pneg %p1370_p1 }
 0x1f9   : > { %1158 = vpush %v913_v58 }
 0x1fa   : > { %p1378_p2 = pnand %p1377_p12, %p1371_p8 }
 0x226   : > { %s1157_s2 = spop %1156 }
 0x227   : > { %v711_v59 = vstv %s1157_s2 }
 0x22a   : > { %s1159_s12 = spop %1158 }
 0x22b   : > { %v915_v34 = vstv %s1159_s12 }
 0x22c   : > { %v916_v45 = vadd.f32 %v915_v34, %v711_v59 }
 0x22e   : > { %v917_v37 = vmul.f32 0.00024414063, %v916_v45 }
 0x230   : > { %v920_v13 = vsub.f32 %v2251_v43, %v917_v37  ;;  %v921_v2 = vsub.f32 %v2253_v32, %v917_v37  ;;  %v940_v25 = vsub.f32 %v2259_v48, %v917_v37  ;;  %v941_v12 = vsub.f32 %v2261_v49, %v917_v37 }
 0x232   : > { %v922_v20 = vmul.f32 %v920_v13, %v2456_v63  ;;  %v923_v4 = vmul.f32 %v921_v2, %v2457_v26  ;;  %v942_v29 = vmul.f32 %v940_v25, %v2456_v63  ;;  %v943_v10 = vmul.f32 %v941_v12, %v2457_v26 }
 0x234   : > { %v924_v21 = vmul.f32 %v922_v20, %v922_v20  ;;  %v925_v31 = vmul.f32 %v923_v4, %v923_v4  ;;  %v944_v39 = vmul.f32 %v942_v29, %v942_v29  ;;  %v945_v62 = vmul.f32 %v943_v10, %v943_v10 }
 0x236   : > { %v926_v35 = vadd.f32 %v925_v31, %v924_v21  ;;  %v946_v50 = vadd.f32 %v945_v62, %v944_v39 }
 0x238   : > { %927 = vadd.xlane.f32.xlu0 %v926_v35 }
 0x23c   : > { %947 = vadd.xlane.f32.xlu0 %v946_v50 }
 0x2c5   : > { %v928_v24 = vpop.xlane.xlu0 %927 }
 0x2c6   : > { %v929_v52 = vrot.slane %v928_v24, 4 }
 0x2c8   : > { %v930_v18 = vadd.f32 %v929_v52, %v928_v24 }
 0x2c9   : > { %v948_v19 = vpop.xlane.xlu0 %947 }
 0x2ca   : > { %v931_v14 = vrot.slane %v930_v18, 2  ;;  %v949_v41 = vrot.slane %v948_v19, 4 }
 0x2cc   : > { %v950_v8 = vadd.f32 %v949_v41, %v948_v19  ;;  %v932_v28 = vadd.f32 %v931_v14, %v930_v18 }
 0x2ce   : > { %v951_v57 = vrot.slane %v950_v8, 2  ;;  %v933_v61 = vrot.slane %v932_v28, 1 }
 0x2d0   : > { %v952_v60 = vadd.f32 %v951_v57, %v950_v8  ;;  %v934_v54 = vadd.f32 %v933_v61, %v932_v28 }
 0x2d2   : > { %1160 = vpush %v934_v54  ;;  %v953_v15 = vrot.slane %v952_v60, 1 }
 0x2d4   : > { %v954_v1 = vadd.f32 %v953_v15, %v952_v60 }
 0x2d6   : > { %1162 = vpush %v954_v1 }
 0x303   : > { %s1161_s3 = spop %1160 }
 0x304   : > { %v936_v40 = vstv %s1161_s3 }
 0x307   : > { %s1163_s4 = spop %1162 }
 0x308   : > { %v956_v0 = vstv %s1163_s4 }
 0x309   : > { %v957_v27 = vadd.f32 %v956_v0, %v936_v40 }
 0x30b   : > { %v958_v42 = vmul.f32 0.00024414063, %v957_v27 }
 0x30d   : > { %v960_v23 = vadd.f32 1e-05, %v958_v42 }
 0x30f   : > { %1265 = vrsqrt.f32 %v960_v23 }
 0x319   : > { %v1266_v53 = vpop.eup %1265 }
 0x31a   : > { %v963_v22 = vmul.f32 %v1266_v53, %v962_v6 }
 0x31c   : > { %v965_v44 = vmul.f32 %v963_v22, %v917_v37  ;;  %v968_v47 = vmul.f32 %v963_v22, %v2251_v43  ;;  %v969_v9 = vmul.f32 %v963_v22, %v2253_v32  ;;  %v980_v30 = vmul.f32 %v963_v22, %v2259_v48 }
 0x31d   : > { %v981_v36 = vmul.f32 %v963_v22, %v2261_v49 }
 0x31e   : > { %v967_v17 = vsub.f32 %v966_v46, %v965_v44 }
 0x320   : > { %v970_v3 = vadd.f32 %v968_v47, %v967_v17  ;;  %v971_v7 = vadd.f32 %v969_v9, %v967_v17  ;;  %v982_v43 = vadd.f32 %v980_v30, %v967_v17  ;;  %v983_v5 = vadd.f32 %v981_v36, %v967_v17 }
 0x322   : > { %v974_v32 = vmax.f32 %v972_v11, %v970_v3  ;;  %v975_v48 = vmax.f32 %v973_v33, %v971_v7  ;;  %v986_v49 = vmax.f32 %v1145_v16, %v982_v43  ;;  %v987_v38 = vmax.f32 %v1146_v55, %v983_v5 }
 0x324   : > { %976 = vst [vmem:[%s295_s30] sm:$0xff] %v974_v32  ;;  %977 = vst [vmem:[%s295_s30 + $0x8] sm:$0xff] %v975_v48 }
 0x325   : > { %1147 = vst [vmem:[%s295_s30 + $0x10] sm:$0xff] %v986_v49  ;;  %1148 = vst [vmem:[%s295_s30 + $0x18] sm:$0xff] %v987_v38 }
 0x326   : > { %1381 = shalt.err (!%p1378_p2)
}
 0x327   : > { %s1382_s28 = scalar_lea.hbm %s2289_s13, 512  ;;  %s1386_s16 = scalar_lea.hbm %s2340_s5, 2048 }
 0x328   : > { %p1383_p6 = scmp.ne.s32.totalorder %s2289_s13, %s1382_s28  ;;  %p1387_p13 = scmp.lt.u32.totalorder %s2289_s13, %s2340_s5 }
 0x329   : > { %p1388_p0 = scmp.lt.u32.totalorder %s1386_s16, %s1382_s28  ;;  %p1390_p9 = scmp.lt.u32.totalorder %s1382_s28, %s2289_s13 }
 0x32a   : > { %p1384_p4 = pnand %p1383_p6, %p1635_p11 }
 0x32b   : > { %p1389_p5 = por %p1388_p0, %p1387_p13 }
 0x32c   : > { %p1385_p10 = pneg %p1384_p4 }
 0x32d   : > { %p1391_p1 = por %p1390_p9, %p1389_p5 }
 0x32f   : > { %p1392_p8 = pnand %p1391_p1, %p1385_p10 }
 0x331   : > { %1395 = shalt.err (!%p1392_p8)
}
 0x332   : > { %s1470_s0 = smov 256   ;;  %s1471_s2 = smov 1024  }
 0x333   : > { %s2459_s12 = smov 16  }
 0x334   : > { %1182 = dma.vmem_to_hbm [thread:$0]  (%p1635_p11), %s2291_s19, 512, %s2289_s13, %s992_s22, %s1470_s0, %s1471_s2, %s2459_s12  }
 0x335 PF: > { %p1214_p3 = scmp.ge.s32.totalorder %s1450_s21, 2  ;;  %s1020_s3 = sand.u32 1, %s1438_s18  }
 0x336   : > { %p2460_p7 = scmp.ne.s32.totalorder %s2382_s25, 0  ;;  %s1021_s4 = scalar_lea.sflag [#allocation5], %s1020_s3 }
 0x338   : > { %p1202_p12 = pnand %p1214_p3, %p2460_p7 }
 0x33a   : > { %1433 = dma.done.wait (!%p1202_p12), %s1021_s4, 512  }
 0x33b   : > { %1435 = vsyncadd (!%p1202_p12), %s1021_s4, 4294966784  ;;  %s2461_s21 = sld [smem:[#allocation23_spill]]  ;;  %s2462_s18 = sld [smem:[#allocation21_spill]] }
 0x33c   : > { %s2463_s19 = sld [smem:[#allocation22_spill]]  ;;  %s2464_s20 = sld [smem:[#allocation24_spill]] }
 0x341   : > { %p22_p2 = scmp.ge.s32.totalorder %s2461_s21, 6  }
 0x343   :  { %24 = sbr.rel (!%p22_p2) target bundleno = 15 (0xf), region = 115 }
 0x34a   :  { %1026 = vsyncpa [#allocation4], 1 }
 0x34b   :  { %1028 = vsyncpa [#allocation4 + $0x1], 1 }
 0x34c   :  { %1029 = vsyncpa [#allocation13], 1 }
 0x34d   :  { %1031 = vsyncpa [#allocation13 + $0x1], 1 }
 0x34e   :  { %1032 = vsyncpa [#allocation5], 1 }
 0x34f   :  { %1034 = vsyncpa [#allocation5 + $0x1], 1 }
 0x350   :  { %1035 = vsyncpa [#allocation6], 1 }
 0x351   :  { %1037 = vsyncpa [#allocation6 + $0x1], 1 }
 0x352   :  { %1038 = vsyncpa [#allocation7], 1 }
 0x353   :  { %1040 = vsyncpa [#allocation7 + $0x1], 1 }
 0x354   :  { %1041 = vsyncpa [#allocation10], 1 }

</bundles_post_ra>
